<compile_context>
chip_gen: v7x
topology: tpu7x:2x2x1
jax: 0.10.0
libtpu: 0.0.40
codegen_flags: <defaults>
</compile_context>

<pallas_src>
import math

import numpy as np
import jax
import jax.numpy as jnp
from jax import lax
from jax.experimental import pallas as pl
from jax.experimental.pallas import tpu as pltpu


_MAX_UNROLL_BLOCKS = 8   # per-step block loops longer than this use lax.fori_loop


def _round_up(v, m):
    return -(-v // m) * m


# ----------------------------------------------------------------------------
# Kernel factory.  One grid step processes Bt sequences of length L.
# Scratch h: (L, Bt, 2*Hp) f32, lanes [0:Hp] = Re, [Hp:2Hp] = Im.
# ----------------------------------------------------------------------------
def _make_kernel(S, L, Bt, Hp, E_true):
    N = L * Bt
    H2 = 2 * Hp

    def kernel(x_ref, m_ref,
               win_ref, bin_ref, wout_ref, bout_ref,
               lpa_ref, lpb_ref, lnw_ref, lnb_ref,
               o_ref, h_ref):
        # ---- fused complex in_proj (gamma folded on host), bf16 MXU / f32 acc ----
        x3 = x_ref[...]                                    # (L, Bt, Ep) f32
        x2 = x3.reshape(N, x3.shape[-1])                   # (N, Ep), layout-preserving
        xb = x2.astype(jnp.bfloat16)
        h0 = jnp.dot(xb, win_ref[...],
                     preferred_element_type=jnp.float32) + bin_ref[...]   # (N, 2Hp)
        h_ref[...] = h0.reshape(L, Bt, H2)

        # ---- recursive-doubling masked linear recurrence -------------------------
        # Position-major layout: every (step, block) update reads one (Bt, 2Hp)
        # boundary tile and writes one dense (half, Bt, 2Hp) tile, batched over Bt
        # sequences.  Instruction count per step is L/l, independent of batch.
        for i in range(1, S + 1):
            half = 1 << (i - 1)
            l = 2 * half
            nblk = L // l
            # lambda^(o+1), o = 0..half-1, fused coefficient tables:
            #   update = lpa * [Re|Im] + lpb * [Im|Re]
            lpa = lpa_ref[pl.ds(0, half), :][:, None, :]   # (half, 1, 2Hp)
            lpb = lpb_ref[pl.ds(0, half), :][:, None, :]

            def block_update(blk, half=half, l=l, lpa=lpa, lpb=lpb):
                if isinstance(blk, int):
                    row0 = blk * l
                else:
                    row0 = pl.multiple_of(blk * l, l)      # alignment hint (dynamic path)
                src = row0 + half - 1                      # block-boundary position
                dst = row0 + half                          # start of the second half
                gate = m_ref[src]                          # (Bt, 1) boundary mask value
                bnd = h_ref[src] * gate                    # (Bt, 2Hp) = [Re | Im]
                bnd_sw = pltpu.roll(bnd, Hp, 1)            # (Bt, 2Hp) = [Im | Re] (XLU)
                upd = lpa * bnd[None] + lpb * bnd_sw[None]  # (half, Bt, 2Hp)
                cur = h_ref[pl.ds(dst, half)]
                h_ref[pl.ds(dst, half)] = cur + upd

            if nblk <= _MAX_UNROLL_BLOCKS:
                for blk in range(nblk):                    # short loop: static unroll
                    block_update(blk)
            else:
                def body(blk, carry, _upd=block_update):   # long loop: visible scf.for
                    _upd(blk)
                    return carry
                lax.fori_loop(0, nblk, body, 0)

        # ---- fused complex out_proj (real part) + residual ------------------------
        hb = h_ref[...].reshape(N, H2).astype(jnp.bfloat16)
        y = (jnp.dot(hb, wout_ref[...], preferred_element_type=jnp.float32)
             + bout_ref[...] + x2)                         # (N, Ep)
        # TODO(synk): nn.Dropout(p=0.1) treated as identity (inference mode).

        # ---- LayerNorm over the TRUE embedding width ------------------------------
        # Padded lanes of y are exactly zero, so single-pass sums over the padded
        # width with a 1/E_true divisor give the correct statistics.
        inv_e = 1.0 / E_true
        s1 = jnp.sum(y, axis=-1, keepdims=True)
        s2 = jnp.sum(y * y, axis=-1, keepdims=True)
        mu = s1 * inv_e
        var = jnp.maximum(s2 * inv_e - mu * mu, 0.0)
        yn = (y - mu) * lax.rsqrt(var + 1e-5) * lnw_ref[...] + lnb_ref[...]
        o_ref[...] = yn.reshape(o_ref.shape)

    return kernel


# ----------------------------------------------------------------------------
# Parameter init (deterministic, mirrors the shapes in LRULayer.__init__)
# ----------------------------------------------------------------------------
def init_params(key, d_model, r_min=0.8, r_max=0.99):
    E = d_model
    H = 2 * d_model
    ks = jax.random.split(key, 8)

    u1 = np.asarray(jax.random.uniform(ks[0], (H,)), np.float32)
    u2 = np.asarray(jax.random.uniform(ks[1], (H,)), np.float32)
    nu_log = np.log(-0.5 * np.log(u1 * (r_max ** 2 - r_min ** 2) + r_min ** 2)).astype(np.float32)
    theta_log = np.log(u2 * 2.0 * np.pi).astype(np.float32)
    diag_lambda = np.exp(-np.exp(nu_log) + 1j * np.exp(theta_log)).astype(np.complex64)
    gamma_log = np.log(np.sqrt(1.0 - np.abs(diag_lambda) ** 2)).astype(np.float32)

    s_in = 1.0 / math.sqrt(E)
    Win = (np.asarray(jax.random.uniform(ks[2], (H, E), minval=-s_in, maxval=s_in), np.float32)
           + 1j * np.asarray(jax.random.uniform(ks[3], (H, E), minval=-s_in, maxval=s_in), np.float32)
           ).astype(np.complex64)
    bin_ = (np.asarray(jax.random.uniform(ks[4], (H,), minval=-s_in, maxval=s_in), np.float32)
            + 1j * np.asarray(jax.random.uniform(ks[5], (H,), minval=-s_in, maxval=s_in), np.float32)
            ).astype(np.complex64)

    s_out = 1.0 / math.sqrt(H)
    Wout = (np.asarray(jax.random.uniform(ks[6], (E, H), minval=-s_out, maxval=s_out), np.float32)
            + 1j * np.asarray(jax.random.uniform(ks[7], (E, H), minval=-s_out, maxval=s_out), np.float32)
            ).astype(np.complex64)
    bout = (np.zeros((E,), np.float32) + 1j * np.zeros((E,), np.float32)).astype(np.complex64)

    return dict(nu_log=nu_log, theta_log=theta_log, gamma_log=gamma_log,
                Win=Win, bin=bin_, Wout=Wout, bout=bout,
                ln_w=np.ones((E,), np.float32), ln_b=np.zeros((E,), np.float32))


# ----------------------------------------------------------------------------
# One-time host-side weight preparation (call once, reuse across invocations):
#   - fold gamma into the in-projection
#   - fuse Re/Im into single MXU weights, lane-pad E/H to multiples of 128
#   - cast matmul weights to bf16 (biases / LN params / tables stay f32)
#   - compact lambda-power tables (same doubling recurrence as the reference),
#     pre-arranged as the fused [Re|Re] / [-Im|Im] coefficient slabs
#   (on v6e/v7x a lane_multiple of 256 fills the 2x256^2 MXU even better)
# ----------------------------------------------------------------------------
def prepare_lru_weights(params, L, lane_multiple=128):
    H, E = params["Win"].shape
    Ep = _round_up(E, lane_multiple)
    Hp = _round_up(H, lane_multiple)

    nu = np.exp(params["nu_log"])
    theta = np.exp(params["theta_log"])
    gamma = np.exp(params["gamma_log"]).astype(np.float32)
    lamb = np.exp(-nu + 1j * theta).astype(np.complex64)              # (H,)

    # lambda^(o+1) table, built with the SAME doubling recurrence as the reference
    Lh = max(L // 2, 1)
    lp = lamb[None, :].astype(np.complex64)
    while lp.shape[0] < Lh:
        lp = np.concatenate([lp, lp * lp[-1]], axis=0)
    lp = lp[:Lh]                                                      # (Lh, H)

    # fused complex-multiply coefficients: update = lpa*[Re|Im] + lpb*[Im|Re]
    lpa = np.zeros((Lh, 2 * Hp), np.float32)
    lpb = np.zeros((Lh, 2 * Hp), np.float32)
    lpa[:, :H] = lp.real
    lpa[:, Hp:Hp + H] = lp.real
    lpb[:, :H] = -lp.imag
    lpb[:, Hp:Hp + H] = lp.imag

    # in_proj: fold gamma, fuse Re|Im output lanes, pad, bf16
    Wg = params["Win"] * gamma[:, None]
    bg = params["bin"] * gamma
    win = np.zeros((Ep, 2 * Hp), np.float32)
    win[:E, :H] = Wg.real.T
    win[:E, Hp:Hp + H] = Wg.imag.T
    binf = np.zeros((1, 2 * Hp), np.float32)
    binf[0, :H] = bg.real
    binf[0, Hp:Hp + H] = bg.imag

    # out_proj real part: hr @ Wr.T - hi @ Wi.T  ->  single stacked (2Hp, Ep) weight
    wout = np.zeros((2 * Hp, Ep), np.float32)
    wout[:H, :E] = params["Wout"].real.T
    wout[Hp:Hp + H, :E] = -params["Wout"].imag.T
    boutf = np.zeros((1, Ep), np.float32)
    boutf[0, :E] = params["bout"].real

    lnw = np.zeros((1, Ep), np.float32)
    lnw[0, :E] = params["ln_w"]
    lnb = np.zeros((1, Ep), np.float32)
    lnb[0, :E] = params["ln_b"]

    return dict(
        win=jnp.asarray(win, jnp.bfloat16), bin=jnp.asarray(binf),
        wout=jnp.asarray(wout, jnp.bfloat16), bout=jnp.asarray(boutf),
        lpa=jnp.asarray(lpa), lpb=jnp.asarray(lpb),
        lnw=jnp.asarray(lnw), lnb=jnp.asarray(lnb),
        E=E, Ep=Ep, H=H, Hp=Hp, L=L, Lh=Lh,
    )


# ----------------------------------------------------------------------------
# Batch-tile / VMEM budgeting
# ----------------------------------------------------------------------------
def _pick_batch_tile(B, L, Ep, Hp, vmem_budget_bytes=48 * 1024 * 1024):
    """Largest multiple-of-8 batch tile that fits the VMEM budget (48 MiB default
    keeps v7x's 64 MiB physical VMEM comfortable); prefers >= 2 grid steps so the
    'parallel' axis can shard across v7x's two TensorCores."""
    # per batch-row bytes: x in (2 bufs) + out (2 bufs) + mask (2 bufs) + f32 h scratch
    per_row = L * (2 * Ep * 4 + 2 * Ep * 4 + 2 * 4 + 2 * Hp * 4)
    bt = max(8, (vmem_budget_bytes // max(per_row, 1)) // 8 * 8)
    b_ceil = _round_up(B, 8)
    bt = min(bt, b_ceil)
    if b_ceil // bt < 2 and b_ceil >= 16:
        bt = max(8, (b_ceil // 2) // 8 * 8)
    return int(bt)


def _vmem_limit_bytes(L, Bt, Ep, Hp, Lh, single_buffer_consts):
    nbuf = 1 if single_buffer_consts else 2
    blocks = L * Bt * (2 * Ep * 4 + 2 * Ep * 4 + 2 * 4) + L * Bt * 2 * Hp * 4
    consts = nbuf * (Ep * 2 * Hp * 2 + 2 * Hp * 4          # in_proj W (bf16), b
                     + 2 * Hp * Ep * 2 + Ep * 4            # out_proj W (bf16), b
                     + 2 * _round_up(Lh, 8) * 2 * Hp * 4   # lambda tables
                     + 2 * Ep * 4)                         # layernorm params
    return int(min(100 * 1024 * 1024, max(32 * 1024 * 1024, 2 * (blocks + consts))))


def _build_call(L, Bt, Bpad, Ep, Hp, Lh, E_true, single_buffer_consts):
    S = int(round(math.log2(L)))
    G = Bpad // Bt
    kernel = _make_kernel(S, L, Bt, Hp, E_true)

    # constants: index map is the same every grid step -> single buffer is enough
    pm = dict(pipeline_mode=pl.Buffered(1)) if single_buffer_consts else {}

    def cspec(shape):
        nd = len(shape)
        return pl.BlockSpec(shape, lambda g, _nd=nd: (0,) * _nd, **pm)

    in_specs = [
        pl.BlockSpec((L, Bt, Ep), lambda g: (0, g, 0)),    # x  (position-major)
        pl.BlockSpec((L, Bt, 1), lambda g: (0, g, 0)),     # mask
        cspec((Ep, 2 * Hp)), cspec((1, 2 * Hp)),           # fused in_proj W, b
        cspec((2 * Hp, Ep)), cspec((1, Ep)),               # fused out_proj W, b
        cspec((Lh, 2 * Hp)), cspec((Lh, 2 * Hp)),          # lambda tables [Re|Re], [-Im|Im]
        cspec((1, Ep)), cspec((1, Ep)),                    # layernorm weight / bias
    ]
    out_spec = pl.BlockSpec((L, Bt, Ep), lambda g: (0, g, 0))

    return pl.pallas_call(
        kernel,
        out_shape=jax.ShapeDtypeStruct((L, Bpad, Ep), jnp.float32),
        grid=(G,),
        in_specs=in_specs,
        out_specs=out_spec,
        scratch_shapes=[pltpu.VMEM((L, Bt, 2 * Hp), jnp.float32)],
        compiler_params=pltpu.CompilerParams(
            dimension_semantics=("parallel",),
            vmem_limit_bytes=_vmem_limit_bytes(L, Bt, Ep, Hp, Lh, single_buffer_consts)),
    )


# ----------------------------------------------------------------------------
# Wrapper: pad batch (sublanes) and embedding (lanes), go position-major, call.
# ----------------------------------------------------------------------------
def lru_layer_pallas(x, mask, w, batch_tile=None):
    x = jnp.asarray(x, jnp.float32)
    B, L, E = x.shape
    assert L == w["L"] and E == w["E"]
    S = int(round(math.log2(L)))
    assert (1 << S) == L, "L must be a power of two (same assumption as the reference)"
    Ep, Hp, Lh = w["Ep"], w["Hp"], w["Lh"]

    Bt = batch_tile if batch_tile is not None else _pick_batch_tile(B, L, Ep, Hp)
    Bt = _round_up(max(Bt, 1), 8)
    Bpad = _round_up(B, Bt)

    # zero-pad batch / embedding, transpose to position-major (layout plumbing only)
    xp = jnp.zeros((Bpad, L, Ep), jnp.float32).at[:B, :, :E].set(x)
    mp = jnp.zeros((Bpad, L), jnp.float32).at[:B, :].set(jnp.asarray(mask, jnp.float32))
    x3 = xp.transpose(1, 0, 2)                 # (L, Bpad, Ep)
    m3 = mp.transpose(1, 0)[:, :, None]        # (L, Bpad, 1)

    args = (x3, m3, w["win"], w["bin"], w["wout"], w["bout"],
            w["lpa"], w["lpb"], w["lnw"], w["lnb"])
    try:
        out3 = _build_call(L, Bt, Bpad, Ep, Hp, Lh, E, True)(*args)
        out3 = jax.block_until_ready(out3)
    except Exception:
        # portability fallback for jax versions without pipeline_mode=pl.Buffered support
        out3 = _build_call(L, Bt, Bpad, Ep, Hp, Lh, E, False)(*args)

    return out3.transpose(1, 0, 2)[:B, :, :E]


# ----------------------------------------------------------------------------
# Pure-numpy reference (mirrors the PyTorch forward, dropout=identity)
# ----------------------------------------------------------------------------
def ref_forward_np(x, mask, params):
    x = np.asarray(x, np.float32)
    mask = np.asarray(mask, np.float32)
    nu = np.exp(params["nu_log"])[None, :]
    theta = np.exp(params["theta_log"])[None, :]
    gamma = np.exp(params["gamma_log"])[None, :]
    lamb = np.exp(-nu + 1j * theta).astype(np.complex64)           # (1, H)

    h = (x.astype(np.complex64) @ params["Win"].T + params["bin"]) * gamma
    B, L, D = h.shape
    log2L = int(math.ceil(math.log2(L)))
    for i in range(1, log2L + 1):
        l = 2 ** i
        h = h.reshape(B * L // l, l, D)
        m_ = mask.reshape(B * L // l, l)
        h1, h2 = h[:, : l // 2], h[:, l // 2:]
        if i > 1:
            lamb = np.concatenate([lamb, lamb * lamb[-1]], axis=0)
        h2 = h2 + lamb * h1[:, -1:] * m_[:, l // 2 - 1: l // 2][..., None]
        h = np.concatenate([h1, h2], axis=1)
    h = h.reshape(B, L, D)

    y = (h @ params["Wout"].T + params["bout"]).real.astype(np.float32) + x
    mu = y.mean(-1, keepdims=True)
    var = ((y - mu) ** 2).mean(-1, keepdims=True)
    yn = (y - mu) / np.sqrt(var + 1e-5)
    return yn * params["ln_w"] + params["ln_b"]


if __name__ == "__main__":
    d_model = 16          # embed_size E; hidden_size H = 2*E = 32
    B, L = 2, 8           # L must be a power of two (same assumption as the reference)

    key = jax.random.PRNGKey(0)
    kx, kp = jax.random.split(key)
    x = jax.random.normal(kx, (B, L, d_model), dtype=jnp.float32)
    lens = jnp.array([L, 5])
    mask = (jnp.arange(L)[None, :] < lens[:, None]).astype(jnp.float32)   # (B, L) 0/1

    params = init_params(kp, d_model)
    w = prepare_lru_weights(params, L)       # one-time host prep (reused across calls)

    out = lru_layer_pallas(x, mask, w)
    out = jax.block_until_ready(out)

    ref = ref_forward_np(np.asarray(x), np.asarray(mask), params)
    # tolerance accounts for bf16 MXU projections (scan/residual/LN stay f32)
    np.testing.assert_allclose(np.asarray(out), ref, rtol=3e-2, atol=3e-2)

    print("KERNEL_OK")
</pallas_src>

<mosaic_0001>
module attributes {stable_mosaic.version = 11 : i64} {
  func.func @kernel(%arg0: i32, %arg1: memref<8x8x128xf32, #tpu.memory_space<vmem>>, %arg2: memref<8x8x1xf32, #tpu.memory_space<vmem>>, %arg3: memref<128x256xbf16, #tpu.memory_space<vmem>>, %arg4: memref<1x256xf32, #tpu.memory_space<vmem>>, %arg5: memref<256x128xbf16, #tpu.memory_space<vmem>>, %arg6: memref<1x128xf32, #tpu.memory_space<vmem>>, %arg7: memref<4x256xf32, #tpu.memory_space<vmem>>, %arg8: memref<4x256xf32, #tpu.memory_space<vmem>>, %arg9: memref<1x128xf32, #tpu.memory_space<vmem>>, %arg10: memref<1x128xf32, #tpu.memory_space<vmem>>, %arg11: memref<8x8x128xf32, #tpu.memory_space<vmem>>, %arg12: memref<8x8x256xf32, #tpu.memory_space<vmem>>) attributes {dimension_semantics = [#tpu.dimension_semantics<parallel>], iteration_bounds = array<i64: 1>, scalar_prefetch = 0 : i64, scratch_operands = 1 : i64, tpu.core_type = #tpu.core_type<tc>, window_params = [{transform_indices = @transform_0, window_bounds = array<i64: 8, 8, 128>}, {transform_indices = @transform_1, window_bounds = array<i64: 8, 8, 1>}, {pipeline_mode = #tpu.pipeline_mode<synchronous>, transform_indices = @transform_2, window_bounds = array<i64: 128, 256>}, {pipeline_mode = #tpu.pipeline_mode<synchronous>, transform_indices = @transform_3, window_bounds = array<i64: 1, 256>}, {pipeline_mode = #tpu.pipeline_mode<synchronous>, transform_indices = @transform_4, window_bounds = array<i64: 256, 128>}, {pipeline_mode = #tpu.pipeline_mode<synchronous>, transform_indices = @transform_5, window_bounds = array<i64: 1, 128>}, {pipeline_mode = #tpu.pipeline_mode<synchronous>, transform_indices = @transform_6, window_bounds = array<i64: 4, 256>}, {pipeline_mode = #tpu.pipeline_mode<synchronous>, transform_indices = @transform_7, window_bounds = array<i64: 4, 256>}, {pipeline_mode = #tpu.pipeline_mode<synchronous>, transform_indices = @transform_8, window_bounds = array<i64: 1, 128>}, {pipeline_mode = #tpu.pipeline_mode<synchronous>, transform_indices = @transform_9, window_bounds = array<i64: 1, 128>}, {transform_indices = @transform_10, window_bounds = array<i64: 8, 8, 128>}]} {
    %c0 = arith.constant 0 : index
    %c0_0 = arith.constant 0 : index
    %c0_1 = arith.constant 0 : index
    %0 = vector.load %arg1[%c0, %c0_0, %c0_1] : memref<8x8x128xf32, #tpu.memory_space<vmem>>, vector<8x8x128xf32>
    %1 = vector.shape_cast %0 : vector<8x8x128xf32> to vector<64x128xf32>
    %2 = arith.truncf %1 : vector<64x128xf32> to vector<64x128xbf16>
    %c0_2 = arith.constant 0 : index
    %c0_3 = arith.constant 0 : index
    %3 = vector.load %arg3[%c0_2, %c0_3] : memref<128x256xbf16, #tpu.memory_space<vmem>>, vector<128x256xbf16>
    %cst = arith.constant dense<0.000000e+00> : vector<64x256xf32>
    %4 = tpu.matmul %2, %3, %cst {dimension_numbers = #tpu.dot_dimension_numbers<[1], [0], [0], [1], [0, 0, 1, 1], [], []>} : vector<64x128xbf16>, vector<128x256xbf16>, vector<64x256xf32> -> vector<64x256xf32>
    %c0_4 = arith.constant 0 : index
    %c0_5 = arith.constant 0 : index
    %5 = vector.load %arg4[%c0_4, %c0_5] : memref<1x256xf32, #tpu.memory_space<vmem>>, vector<1x256xf32>
    %6 = vector.broadcast %5 : vector<1x256xf32> to vector<64x256xf32>
    %7 = arith.addf %4, %6 : vector<64x256xf32>
    %8 = vector.shape_cast %7 : vector<64x256xf32> to vector<8x8x256xf32>
    %c0_6 = arith.constant 0 : index
    %c0_7 = arith.constant 0 : index
    %c0_8 = arith.constant 0 : index
    %9 = vector.load %arg12[%c0_6, %c0_7, %c0_8] : memref<8x8x256xf32, #tpu.memory_space<vmem>>, vector<8x8x256xf32>
    tpu.vector_store %arg12[%c0_6, %c0_7, %c0_8], %8 {strides = array<i32>} : memref<8x8x256xf32, #tpu.memory_space<vmem>>, vector<8x8x256xf32>,
    %c0_9 = arith.constant 0 : index
    %c0_10 = arith.constant 0 : index
    %10 = vector.load %arg7[%c0_9, %c0_10] : memref<4x256xf32, #tpu.memory_space<vmem>>, vector<1x256xf32>
    %11 = vector.shape_cast %10 : vector<1x256xf32> to vector<1x1x256xf32>
    %c0_11 = arith.constant 0 : index
    %c0_12 = arith.constant 0 : index
    %12 = vector.load %arg8[%c0_11, %c0_12] : memref<4x256xf32, #tpu.memory_space<vmem>>, vector<1x256xf32>
    %13 = vector.shape_cast %12 : vector<1x256xf32> to vector<1x1x256xf32>
    %c0_13 = arith.constant 0 : index
    %c0_14 = arith.constant 0 : index
    %c0_15 = arith.constant 0 : index
    %14 = vector.load %arg2[%c0_13, %c0_14, %c0_15] : memref<8x8x1xf32, #tpu.memory_space<vmem>>, vector<1x8x1xf32>
    %15 = vector.shape_cast %14 : vector<1x8x1xf32> to vector<8x1xf32>
    %c0_16 = arith.constant 0 : index
    %c0_17 = arith.constant 0 : index
    %c0_18 = arith.constant 0 : index
    %16 = vector.load %arg12[%c0_16, %c0_17, %c0_18] : memref<8x8x256xf32, #tpu.memory_space<vmem>>, vector<1x8x256xf32>
    %17 = vector.shape_cast %16 : vector<1x8x256xf32> to vector<8x256xf32>
    %18 = vector.broadcast %15 : vector<8x1xf32> to vector<8x256xf32>
    %19 = arith.mulf %17, %18 : vector<8x256xf32>
    %c128_i32 = arith.constant 128 : i32
    %20 = tpu.dynamic_rotate %19 by %c128_i32 dim 1 : vector<8x256xf32>, i32 -> vector<8x256xf32>
    %21 = vector.shape_cast %19 : vector<8x256xf32> to vector<1x8x256xf32>
    %22 = vector.broadcast %11 : vector<1x1x256xf32> to vector<1x8x256xf32>
    %23 = arith.mulf %22, %21 : vector<1x8x256xf32>
    %24 = vector.shape_cast %20 : vector<8x256xf32> to vector<1x8x256xf32>
    %25 = vector.broadcast %13 : vector<1x1x256xf32> to vector<1x8x256xf32>
    %26 = arith.mulf %25, %24 : vector<1x8x256xf32>
    %27 = arith.addf %23, %26 : vector<1x8x256xf32>
    %c1 = arith.constant 1 : index
    %c0_19 = arith.constant 0 : index
    %c0_20 = arith.constant 0 : index
    %28 = vector.load %arg12[%c1, %c0_19, %c0_20] : memref<8x8x256xf32, #tpu.memory_space<vmem>>, vector<1x8x256xf32>
    %29 = arith.addf %28, %27 : vector<1x8x256xf32>
    %c1_21 = arith.constant 1 : index
    %c0_22 = arith.constant 0 : index
    %c0_23 = arith.constant 0 : index
    %30 = vector.load %arg12[%c1_21, %c0_22, %c0_23] : memref<8x8x256xf32, #tpu.memory_space<vmem>>, vector<1x8x256xf32>
    tpu.vector_store %arg12[%c1_21, %c0_22, %c0_23], %29 {strides = array<i32>} : memref<8x8x256xf32, #tpu.memory_space<vmem>>, vector<1x8x256xf32>,
    %c2 = arith.constant 2 : index
    %c0_24 = arith.constant 0 : index
    %c0_25 = arith.constant 0 : index
    %31 = vector.load %arg2[%c2, %c0_24, %c0_25] : memref<8x8x1xf32, #tpu.memory_space<vmem>>, vector<1x8x1xf32>
    %32 = vector.shape_cast %31 : vector<1x8x1xf32> to vector<8x1xf32>
    %c2_26 = arith.constant 2 : index
    %c0_27 = arith.constant 0 : index
    %c0_28 = arith.constant 0 : index
    %33 = vector.load %arg12[%c2_26, %c0_27, %c0_28] : memref<8x8x256xf32, #tpu.memory_space<vmem>>, vector<1x8x256xf32>
    %34 = vector.shape_cast %33 : vector<1x8x256xf32> to vector<8x256xf32>
    %35 = vector.broadcast %32 : vector<8x1xf32> to vector<8x256xf32>
    %36 = arith.mulf %34, %35 : vector<8x256xf32>
    %c128_i32_29 = arith.constant 128 : i32
    %37 = tpu.dynamic_rotate %36 by %c128_i32_29 dim 1 : vector<8x256xf32>, i32 -> vector<8x256xf32>
    %38 = vector.shape_cast %36 : vector<8x256xf32> to vector<1x8x256xf32>
    %39 = vector.broadcast %11 : vector<1x1x256xf32> to vector<1x8x256xf32>
    %40 = arith.mulf %39, %38 : vector<1x8x256xf32>
    %41 = vector.shape_cast %37 : vector<8x256xf32> to vector<1x8x256xf32>
    %42 = vector.broadcast %13 : vector<1x1x256xf32> to vector<1x8x256xf32>
    %43 = arith.mulf %42, %41 : vector<1x8x256xf32>
    %44 = arith.addf %40, %43 : vector<1x8x256xf32>
    %c3 = arith.constant 3 : index
    %c0_30 = arith.constant 0 : index
    %c0_31 = arith.constant 0 : index
    %45 = vector.load %arg12[%c3, %c0_30, %c0_31] : memref<8x8x256xf32, #tpu.memory_space<vmem>>, vector<1x8x256xf32>
    %46 = arith.addf %45, %44 : vector<1x8x256xf32>
    %c3_32 = arith.constant 3 : index
    %c0_33 = arith.constant 0 : index
    %c0_34 = arith.constant 0 : index
    %47 = vector.load %arg12[%c3_32, %c0_33, %c0_34] : memref<8x8x256xf32, #tpu.memory_space<vmem>>, vector<1x8x256xf32>
    tpu.vector_store %arg12[%c3_32, %c0_33, %c0_34], %46 {strides = array<i32>} : memref<8x8x256xf32, #tpu.memory_space<vmem>>, vector<1x8x256xf32>,
    %c4 = arith.constant 4 : index
    %c0_35 = arith.constant 0 : index
    %c0_36 = arith.constant 0 : index
    %48 = vector.load %arg2[%c4, %c0_35, %c0_36] : memref<8x8x1xf32, #tpu.memory_space<vmem>>, vector<1x8x1xf32>
    %49 = vector.shape_cast %48 : vector<1x8x1xf32> to vector<8x1xf32>
    %c4_37 = arith.constant 4 : index
    %c0_38 = arith.constant 0 : index
    %c0_39 = arith.constant 0 : index
    %50 = vector.load %arg12[%c4_37, %c0_38, %c0_39] : memref<8x8x256xf32, #tpu.memory_space<vmem>>, vector<1x8x256xf32>
    %51 = vector.shape_cast %50 : vector<1x8x256xf32> to vector<8x256xf32>
    %52 = vector.broadcast %49 : vector<8x1xf32> to vector<8x256xf32>
    %53 = arith.mulf %51, %52 : vector<8x256xf32>
    %c128_i32_40 = arith.constant 128 : i32
    %54 = tpu.dynamic_rotate %53 by %c128_i32_40 dim 1 : vector<8x256xf32>, i32 -> vector<8x256xf32>
    %55 = vector.shape_cast %53 : vector<8x256xf32> to vector<1x8x256xf32>
    %56 = vector.broadcast %11 : vector<1x1x256xf32> to vector<1x8x256xf32>
    %57 = arith.mulf %56, %55 : vector<1x8x256xf32>
    %58 = vector.shape_cast %54 : vector<8x256xf32> to vector<1x8x256xf32>
    %59 = vector.broadcast %13 : vector<1x1x256xf32> to vector<1x8x256xf32>
    %60 = arith.mulf %59, %58 : vector<1x8x256xf32>
    %61 = arith.addf %57, %60 : vector<1x8x256xf32>
    %c5 = arith.constant 5 : index
    %c0_41 = arith.constant 0 : index
    %c0_42 = arith.constant 0 : index
    %62 = vector.load %arg12[%c5, %c0_41, %c0_42] : memref<8x8x256xf32, #tpu.memory_space<vmem>>, vector<1x8x256xf32>
    %63 = arith.addf %62, %61 : vector<1x8x256xf32>
    %c5_43 = arith.constant 5 : index
    %c0_44 = arith.constant 0 : index
    %c0_45 = arith.constant 0 : index
    %64 = vector.load %arg12[%c5_43, %c0_44, %c0_45] : memref<8x8x256xf32, #tpu.memory_space<vmem>>, vector<1x8x256xf32>
    tpu.vector_store %arg12[%c5_43, %c0_44, %c0_45], %63 {strides = array<i32>} : memref<8x8x256xf32, #tpu.memory_space<vmem>>, vector<1x8x256xf32>,
    %c6 = arith.constant 6 : index
    %c0_46 = arith.constant 0 : index
    %c0_47 = arith.constant 0 : index
    %65 = vector.load %arg2[%c6, %c0_46, %c0_47] : memref<8x8x1xf32, #tpu.memory_space<vmem>>, vector<1x8x1xf32>
    %66 = vector.shape_cast %65 : vector<1x8x1xf32> to vector<8x1xf32>
    %c6_48 = arith.constant 6 : index
    %c0_49 = arith.constant 0 : index
    %c0_50 = arith.constant 0 : index
    %67 = vector.load %arg12[%c6_48, %c0_49, %c0_50] : memref<8x8x256xf32, #tpu.memory_space<vmem>>, vector<1x8x256xf32>
    %68 = vector.shape_cast %67 : vector<1x8x256xf32> to vector<8x256xf32>
    %69 = vector.broadcast %66 : vector<8x1xf32> to vector<8x256xf32>
    %70 = arith.mulf %68, %69 : vector<8x256xf32>
    %c128_i32_51 = arith.constant 128 : i32
    %71 = tpu.dynamic_rotate %70 by %c128_i32_51 dim 1 : vector<8x256xf32>, i32 -> vector<8x256xf32>
    %72 = vector.shape_cast %70 : vector<8x256xf32> to vector<1x8x256xf32>
    %73 = vector.broadcast %11 : vector<1x1x256xf32> to vector<1x8x256xf32>
    %74 = arith.mulf %73, %72 : vector<1x8x256xf32>
    %75 = vector.shape_cast %71 : vector<8x256xf32> to vector<1x8x256xf32>
    %76 = vector.broadcast %13 : vector<1x1x256xf32> to vector<1x8x256xf32>
    %77 = arith.mulf %76, %75 : vector<1x8x256xf32>
    %78 = arith.addf %74, %77 : vector<1x8x256xf32>
    %c7 = arith.constant 7 : index
    %c0_52 = arith.constant 0 : index
    %c0_53 = arith.constant 0 : index
    %79 = vector.load %arg12[%c7, %c0_52, %c0_53] : memref<8x8x256xf32, #tpu.memory_space<vmem>>, vector<1x8x256xf32>
    %80 = arith.addf %79, %78 : vector<1x8x256xf32>
    %c7_54 = arith.constant 7 : index
    %c0_55 = arith.constant 0 : index
    %c0_56 = arith.constant 0 : index
    %81 = vector.load %arg12[%c7_54, %c0_55, %c0_56] : memref<8x8x256xf32, #tpu.memory_space<vmem>>, vector<1x8x256xf32>
    tpu.vector_store %arg12[%c7_54, %c0_55, %c0_56], %80 {strides = array<i32>} : memref<8x8x256xf32, #tpu.memory_space<vmem>>, vector<1x8x256xf32>,
    %c0_57 = arith.constant 0 : index
    %c0_58 = arith.constant 0 : index
    %82 = vector.load %arg7[%c0_57, %c0_58] : memref<4x256xf32, #tpu.memory_space<vmem>>, vector<2x256xf32>
    %83 = vector.shape_cast %82 : vector<2x256xf32> to vector<2x1x256xf32>
    %c0_59 = arith.constant 0 : index
    %c0_60 = arith.constant 0 : index
    %84 = vector.load %arg8[%c0_59, %c0_60] : memref<4x256xf32, #tpu.memory_space<vmem>>, vector<2x256xf32>
    %85 = vector.shape_cast %84 : vector<2x256xf32> to vector<2x1x256xf32>
    %c1_61 = arith.constant 1 : index
    %c0_62 = arith.constant 0 : index
    %c0_63 = arith.constant 0 : index
    %86 = vector.load %arg2[%c1_61, %c0_62, %c0_63] : memref<8x8x1xf32, #tpu.memory_space<vmem>>, vector<1x8x1xf32>
    %87 = vector.shape_cast %86 : vector<1x8x1xf32> to vector<8x1xf32>
    %c1_64 = arith.constant 1 : index
    %c0_65 = arith.constant 0 : index
    %c0_66 = arith.constant 0 : index
    %88 = vector.load %arg12[%c1_64, %c0_65, %c0_66] : memref<8x8x256xf32, #tpu.memory_space<vmem>>, vector<1x8x256xf32>
    %89 = vector.shape_cast %88 : vector<1x8x256xf32> to vector<8x256xf32>
    %90 = vector.broadcast %87 : vector<8x1xf32> to vector<8x256xf32>
    %91 = arith.mulf %89, %90 : vector<8x256xf32>
    %c128_i32_67 = arith.constant 128 : i32
    %92 = tpu.dynamic_rotate %91 by %c128_i32_67 dim 1 : vector<8x256xf32>, i32 -> vector<8x256xf32>
    %93 = vector.shape_cast %91 : vector<8x256xf32> to vector<1x8x256xf32>
    %94 = vector.broadcast %83 : vector<2x1x256xf32> to vector<2x8x256xf32>
    %95 = vector.broadcast %93 : vector<1x8x256xf32> to vector<2x8x256xf32>
    %96 = arith.mulf %94, %95 : vector<2x8x256xf32>
    %97 = vector.shape_cast %92 : vector<8x256xf32> to vector<1x8x256xf32>
    %98 = vector.broadcast %85 : vector<2x1x256xf32> to vector<2x8x256xf32>
    %99 = vector.broadcast %97 : vector<1x8x256xf32> to vector<2x8x256xf32>
    %100 = arith.mulf %98, %99 : vector<2x8x256xf32>
    %101 = arith.addf %96, %100 : vector<2x8x256xf32>
    %c2_68 = arith.constant 2 : index
    %c0_69 = arith.constant 0 : index
    %c0_70 = arith.constant 0 : index
    %102 = vector.load %arg12[%c2_68, %c0_69, %c0_70] : memref<8x8x256xf32, #tpu.memory_space<vmem>>, vector<2x8x256xf32>
    %103 = arith.addf %102, %101 : vector<2x8x256xf32>
    %c2_71 = arith.constant 2 : index
    %c0_72 = arith.constant 0 : index
    %c0_73 = arith.constant 0 : index
    %104 = vector.load %arg12[%c2_71, %c0_72, %c0_73] : memref<8x8x256xf32, #tpu.memory_space<vmem>>, vector<2x8x256xf32>
    tpu.vector_store %arg12[%c2_71, %c0_72, %c0_73], %103 {strides = array<i32>} : memref<8x8x256xf32, #tpu.memory_space<vmem>>, vector<2x8x256xf32>,
    %c5_74 = arith.constant 5 : index
    %c0_75 = arith.constant 0 : index
    %c0_76 = arith.constant 0 : index
    %105 = vector.load %arg2[%c5_74, %c0_75, %c0_76] : memref<8x8x1xf32, #tpu.memory_space<vmem>>, vector<1x8x1xf32>
    %106 = vector.shape_cast %105 : vector<1x8x1xf32> to vector<8x1xf32>
    %c5_77 = arith.constant 5 : index
    %c0_78 = arith.constant 0 : index
    %c0_79 = arith.constant 0 : index
    %107 = vector.load %arg12[%c5_77, %c0_78, %c0_79] : memref<8x8x256xf32, #tpu.memory_space<vmem>>, vector<1x8x256xf32>
    %108 = vector.shape_cast %107 : vector<1x8x256xf32> to vector<8x256xf32>
    %109 = vector.broadcast %106 : vector<8x1xf32> to vector<8x256xf32>
    %110 = arith.mulf %108, %109 : vector<8x256xf32>
    %c128_i32_80 = arith.constant 128 : i32
    %111 = tpu.dynamic_rotate %110 by %c128_i32_80 dim 1 : vector<8x256xf32>, i32 -> vector<8x256xf32>
    %112 = vector.shape_cast %110 : vector<8x256xf32> to vector<1x8x256xf32>
    %113 = vector.broadcast %83 : vector<2x1x256xf32> to vector<2x8x256xf32>
    %114 = vector.broadcast %112 : vector<1x8x256xf32> to vector<2x8x256xf32>
    %115 = arith.mulf %113, %114 : vector<2x8x256xf32>
    %116 = vector.shape_cast %111 : vector<8x256xf32> to vector<1x8x256xf32>
    %117 = vector.broadcast %85 : vector<2x1x256xf32> to vector<2x8x256xf32>
    %118 = vector.broadcast %116 : vector<1x8x256xf32> to vector<2x8x256xf32>
    %119 = arith.mulf %117, %118 : vector<2x8x256xf32>
    %120 = arith.addf %115, %119 : vector<2x8x256xf32>
    %c6_81 = arith.constant 6 : index
    %c0_82 = arith.constant 0 : index
    %c0_83 = arith.constant 0 : index
    %121 = vector.load %arg12[%c6_81, %c0_82, %c0_83] : memref<8x8x256xf32, #tpu.memory_space<vmem>>, vector<2x8x256xf32>
    %122 = arith.addf %121, %120 : vector<2x8x256xf32>
    %c6_84 = arith.constant 6 : index
    %c0_85 = arith.constant 0 : index
    %c0_86 = arith.constant 0 : index
    %123 = vector.load %arg12[%c6_84, %c0_85, %c0_86] : memref<8x8x256xf32, #tpu.memory_space<vmem>>, vector<2x8x256xf32>
    tpu.vector_store %arg12[%c6_84, %c0_85, %c0_86], %122 {strides = array<i32>} : memref<8x8x256xf32, #tpu.memory_space<vmem>>, vector<2x8x256xf32>,
    %c0_87 = arith.constant 0 : index
    %c0_88 = arith.constant 0 : index
    %124 = vector.load %arg7[%c0_87, %c0_88] : memref<4x256xf32, #tpu.memory_space<vmem>>, vector<4x256xf32>
    %125 = vector.shape_cast %124 : vector<4x256xf32> to vector<4x1x256xf32>
    %c0_89 = arith.constant 0 : index
    %c0_90 = arith.constant 0 : index
    %126 = vector.load %arg8[%c0_89, %c0_90] : memref<4x256xf32, #tpu.memory_space<vmem>>, vector<4x256xf32>
    %127 = vector.shape_cast %126 : vector<4x256xf32> to vector<4x1x256xf32>
    %c3_91 = arith.constant 3 : index
    %c0_92 = arith.constant 0 : index
    %c0_93 = arith.constant 0 : index
    %128 = vector.load %arg2[%c3_91, %c0_92, %c0_93] : memref<8x8x1xf32, #tpu.memory_space<vmem>>, vector<1x8x1xf32>
    %129 = vector.shape_cast %128 : vector<1x8x1xf32> to vector<8x1xf32>
    %c3_94 = arith.constant 3 : index
    %c0_95 = arith.constant 0 : index
    %c0_96 = arith.constant 0 : index
    %130 = vector.load %arg12[%c3_94, %c0_95, %c0_96] : memref<8x8x256xf32, #tpu.memory_space<vmem>>, vector<1x8x256xf32>
    %131 = vector.shape_cast %130 : vector<1x8x256xf32> to vector<8x256xf32>
    %132 = vector.broadcast %129 : vector<8x1xf32> to vector<8x256xf32>
    %133 = arith.mulf %131, %132 : vector<8x256xf32>
    %c128_i32_97 = arith.constant 128 : i32
    %134 = tpu.dynamic_rotate %133 by %c128_i32_97 dim 1 : vector<8x256xf32>, i32 -> vector<8x256xf32>
    %135 = vector.shape_cast %133 : vector<8x256xf32> to vector<1x8x256xf32>
    %136 = vector.broadcast %125 : vector<4x1x256xf32> to vector<4x8x256xf32>
    %137 = vector.broadcast %135 : vector<1x8x256xf32> to vector<4x8x256xf32>
    %138 = arith.mulf %136, %137 : vector<4x8x256xf32>
    %139 = vector.shape_cast %134 : vector<8x256xf32> to vector<1x8x256xf32>
    %140 = vector.broadcast %127 : vector<4x1x256xf32> to vector<4x8x256xf32>
    %141 = vector.broadcast %139 : vector<1x8x256xf32> to vector<4x8x256xf32>
    %142 = arith.mulf %140, %141 : vector<4x8x256xf32>
    %143 = arith.addf %138, %142 : vector<4x8x256xf32>
    %c4_98 = arith.constant 4 : index
    %c0_99 = arith.constant 0 : index
    %c0_100 = arith.constant 0 : index
    %144 = vector.load %arg12[%c4_98, %c0_99, %c0_100] : memref<8x8x256xf32, #tpu.memory_space<vmem>>, vector<4x8x256xf32>
    %145 = arith.addf %144, %143 : vector<4x8x256xf32>
    %c4_101 = arith.constant 4 : index
    %c0_102 = arith.constant 0 : index
    %c0_103 = arith.constant 0 : index
    %146 = vector.load %arg12[%c4_101, %c0_102, %c0_103] : memref<8x8x256xf32, #tpu.memory_space<vmem>>, vector<4x8x256xf32>
    tpu.vector_store %arg12[%c4_101, %c0_102, %c0_103], %145 {strides = array<i32>} : memref<8x8x256xf32, #tpu.memory_space<vmem>>, vector<4x8x256xf32>,
    %c0_104 = arith.constant 0 : index
    %c0_105 = arith.constant 0 : index
    %c0_106 = arith.constant 0 : index
    %147 = vector.load %arg12[%c0_104, %c0_105, %c0_106] : memref<8x8x256xf32, #tpu.memory_space<vmem>>, vector<8x8x256xf32>
    %148 = vector.shape_cast %147 : vector<8x8x256xf32> to vector<64x256xf32>
    %149 = arith.truncf %148 : vector<64x256xf32> to vector<64x256xbf16>
    %c0_107 = arith.constant 0 : index
    %c0_108 = arith.constant 0 : index
    %150 = vector.load %arg5[%c0_107, %c0_108] : memref<256x128xbf16, #tpu.memory_space<vmem>>, vector<256x128xbf16>
    %cst_109 = arith.constant dense<0.000000e+00> : vector<64x128xf32>
    %151 = tpu.matmul %149, %150, %cst_109 {dimension_numbers = #tpu.dot_dimension_numbers<[1], [0], [0], [1], [0, 0, 1, 1], [], []>} : vector<64x256xbf16>, vector<256x128xbf16>, vector<64x128xf32> -> vector<64x128xf32>
    %c0_110 = arith.constant 0 : index
    %c0_111 = arith.constant 0 : index
    %152 = vector.load %arg6[%c0_110, %c0_111] : memref<1x128xf32, #tpu.memory_space<vmem>>, vector<1x128xf32>
    %153 = vector.broadcast %152 : vector<1x128xf32> to vector<64x128xf32>
    %154 = arith.addf %151, %153 : vector<64x128xf32>
    %155 = arith.addf %154, %1 : vector<64x128xf32>
    %cst_112 = arith.constant dense<0.000000e+00> : vector<64xf32>
    %156 = vector.multi_reduction <add>, %155, %cst_112 [1] : vector<64x128xf32> to vector<64xf32>
    %157 = vector.shape_cast %156 : vector<64xf32> to vector<64x1xf32>
    %158 = arith.mulf %155, %155 : vector<64x128xf32>
    %cst_113 = arith.constant dense<0.000000e+00> : vector<64xf32>
    %159 = vector.multi_reduction <add>, %158, %cst_113 [1] : vector<64x128xf32> to vector<64xf32>
    %160 = vector.shape_cast %159 : vector<64xf32> to vector<64x1xf32>
    %cst_114 = arith.constant 6.250000e-02 : f32
    %161 = vector.broadcast %cst_114 : f32 to vector<64x1xf32>
    %162 = arith.mulf %157, %161 : vector<64x1xf32>
    %cst_115 = arith.constant 6.250000e-02 : f32
    %163 = vector.broadcast %cst_115 : f32 to vector<64x1xf32>
    %164 = arith.mulf %160, %163 : vector<64x1xf32>
    %165 = arith.mulf %162, %162 : vector<64x1xf32>
    %166 = arith.subf %164, %165 : vector<64x1xf32>
    %cst_116 = arith.constant 0.000000e+00 : f32
    %167 = vector.broadcast %cst_116 : f32 to vector<64x1xf32>
    %168 = arith.maximumf %166, %167 : vector<64x1xf32>
    %169 = vector.broadcast %162 : vector<64x1xf32> to vector<64x128xf32>
    %170 = arith.subf %155, %169 : vector<64x128xf32>
    %cst_117 = arith.constant 9.99999974E-6 : f32
    %171 = vector.broadcast %cst_117 : f32 to vector<64x1xf32>
    %172 = arith.addf %168, %171 : vector<64x1xf32>
    %173 = math.rsqrt %172 : vector<64x1xf32>
    %174 = vector.broadcast %173 : vector<64x1xf32> to vector<64x128xf32>
    %175 = arith.mulf %170, %174 : vector<64x128xf32>
    %c0_118 = arith.constant 0 : index
    %c0_119 = arith.constant 0 : index
    %176 = vector.load %arg9[%c0_118, %c0_119] : memref<1x128xf32, #tpu.memory_space<vmem>>, vector<1x128xf32>
    %177 = vector.broadcast %176 : vector<1x128xf32> to vector<64x128xf32>
    %178 = arith.mulf %175, %177 : vector<64x128xf32>
    %c0_120 = arith.constant 0 : index
    %c0_121 = arith.constant 0 : index
    %179 = vector.load %arg10[%c0_120, %c0_121] : memref<1x128xf32, #tpu.memory_space<vmem>>, vector<1x128xf32>
    %180 = vector.broadcast %179 : vector<1x128xf32> to vector<64x128xf32>
    %181 = arith.addf %178, %180 : vector<64x128xf32>
    %182 = vector.shape_cast %181 : vector<64x128xf32> to vector<8x8x128xf32>
    %c0_122 = arith.constant 0 : index
    %c0_123 = arith.constant 0 : index
    %c0_124 = arith.constant 0 : index
    %183 = vector.load %arg11[%c0_122, %c0_123, %c0_124] : memref<8x8x128xf32, #tpu.memory_space<vmem>>, vector<8x8x128xf32>
    tpu.vector_store %arg11[%c0_122, %c0_123, %c0_124], %182 {strides = array<i32>} : memref<8x8x128xf32, #tpu.memory_space<vmem>>, vector<8x8x128xf32>,
    return
  }
  func.func @transform_0(%arg0: i32) -> (i32, i32, i32) {
    %c0_i32 = arith.constant 0 : i32
    %c0_i32_0 = arith.constant 0 : i32
    %c0_i32_1 = arith.constant 0 : i32
    return %c0_i32, %arg0, %c0_i32_0 : i32, i32, i32
  }
  func.func @transform_1(%arg0: i32) -> (i32, i32, i32) {
    %c0_i32 = arith.constant 0 : i32
    %c0_i32_0 = arith.constant 0 : i32
    %c0_i32_1 = arith.constant 0 : i32
    return %c0_i32, %arg0, %c0_i32_0 : i32, i32, i32
  }
  func.func @transform_2(%arg0: i32) -> (i32, i32) {
    %c0_i32 = arith.constant 0 : i32
    %c0_i32_0 = arith.constant 0 : i32
    %c0_i32_1 = arith.constant 0 : i32
    return %c0_i32, %c0_i32_0 : i32, i32
  }
  func.func @transform_3(%arg0: i32) -> (i32, i32) {
    %c0_i32 = arith.constant 0 : i32
    %c0_i32_0 = arith.constant 0 : i32
    %c0_i32_1 = arith.constant 0 : i32
    return %c0_i32, %c0_i32_0 : i32, i32
  }
  func.func @transform_4(%arg0: i32) -> (i32, i32) {
    %c0_i32 = arith.constant 0 : i32
    %c0_i32_0 = arith.constant 0 : i32
    %c0_i32_1 = arith.constant 0 : i32
    return %c0_i32, %c0_i32_0 : i32, i32
  }
  func.func @transform_5(%arg0: i32) -> (i32, i32) {
    %c0_i32 = arith.constant 0 : i32
    %c0_i32_0 = arith.constant 0 : i32
    %c0_i32_1 = arith.constant 0 : i32
    return %c0_i32, %c0_i32_0 : i32, i32
  }
  func.func @transform_6(%arg0: i32) -> (i32, i32) {
    %c0_i32 = arith.constant 0 : i32
    %c0_i32_0 = arith.constant 0 : i32
    %c0_i32_1 = arith.constant 0 : i32
    return %c0_i32, %c0_i32_0 : i32, i32
  }
  func.func @transform_7(%arg0: i32) -> (i32, i32) {
    %c0_i32 = arith.constant 0 : i32
    %c0_i32_0 = arith.constant 0 : i32
    %c0_i32_1 = arith.constant 0 : i32
    return %c0_i32, %c0_i32_0 : i32, i32
  }
  func.func @transform_8(%arg0: i32) -> (i32, i32) {
    %c0_i32 = arith.constant 0 : i32
    %c0_i32_0 = arith.constant 0 : i32
    %c0_i32_1 = arith.constant 0 : i32
    return %c0_i32, %c0_i32_0 : i32, i32
  }
  func.func @transform_9(%arg0: i32) -> (i32, i32) {
    %c0_i32 = arith.constant 0 : i32
    %c0_i32_0 = arith.constant 0 : i32
    %c0_i32_1 = arith.constant 0 : i32
    return %c0_i32, %c0_i32_0 : i32, i32
  }
  func.func @transform_10(%arg0: i32) -> (i32, i32, i32) {
    %c0_i32 = arith.constant 0 : i32
    %c0_i32_0 = arith.constant 0 : i32
    %c0_i32_1 = arith.constant 0 : i32
    return %c0_i32, %arg0, %c0_i32_0 : i32, i32, i32
  }
}

module attributes {stable_mosaic.version = 11 : i64} {
  func.func @kernel(%arg0: i32, %arg1: memref<8x8x128xf32, #tpu.memory_space<vmem>>, %arg2: memref<8x8x1xf32, #tpu.memory_space<vmem>>, %arg3: memref<128x256xbf16, #tpu.memory_space<vmem>>, %arg4: memref<1x256xf32, #tpu.memory_space<vmem>>, %arg5: memref<256x128xbf16, #tpu.memory_space<vmem>>, %arg6: memref<1x128xf32, #tpu.memory_space<vmem>>, %arg7: memref<4x256xf32, #tpu.memory_space<vmem>>, %arg8: memref<4x256xf32, #tpu.memory_space<vmem>>, %arg9: memref<1x128xf32, #tpu.memory_space<vmem>>, %arg10: memref<1x128xf32, #tpu.memory_space<vmem>>, %arg11: memref<8x8x128xf32, #tpu.memory_space<vmem>>, %arg12: memref<8x8x256xf32, #tpu.memory_space<vmem>>) attributes {dimension_semantics = [#tpu.dimension_semantics<parallel>], iteration_bounds = array<i64: 1>, scalar_prefetch = 0 : i64, scratch_operands = 1 : i64, tpu.core_type = #tpu.core_type<tc>, window_params = [{transform_indices = @transform_0, window_bounds = array<i64: 8, 8, 128>}, {transform_indices = @transform_1, window_bounds = array<i64: 8, 8, 1>}, {pipeline_mode = #tpu.pipeline_mode<synchronous>, transform_indices = @transform_2, window_bounds = array<i64: 128, 256>}, {pipeline_mode = #tpu.pipeline_mode<synchronous>, transform_indices = @transform_3, window_bounds = array<i64: 1, 256>}, {pipeline_mode = #tpu.pipeline_mode<synchronous>, transform_indices = @transform_4, window_bounds = array<i64: 256, 128>}, {pipeline_mode = #tpu.pipeline_mode<synchronous>, transform_indices = @transform_5, window_bounds = array<i64: 1, 128>}, {pipeline_mode = #tpu.pipeline_mode<synchronous>, transform_indices = @transform_6, window_bounds = array<i64: 4, 256>}, {pipeline_mode = #tpu.pipeline_mode<synchronous>, transform_indices = @transform_7, window_bounds = array<i64: 4, 256>}, {pipeline_mode = #tpu.pipeline_mode<synchronous>, transform_indices = @transform_8, window_bounds = array<i64: 1, 128>}, {pipeline_mode = #tpu.pipeline_mode<synchronous>, transform_indices = @transform_9, window_bounds = array<i64: 1, 128>}, {transform_indices = @transform_10, window_bounds = array<i64: 8, 8, 128>}]} {
    %c0 = arith.constant 0 : index
    %c0_0 = arith.constant 0 : index
    %c0_1 = arith.constant 0 : index
    %0 = vector.load %arg1[%c0, %c0_0, %c0_1] : memref<8x8x128xf32, #tpu.memory_space<vmem>>, vector<8x8x128xf32>
    %1 = vector.shape_cast %0 : vector<8x8x128xf32> to vector<64x128xf32>
    %2 = arith.truncf %1 : vector<64x128xf32> to vector<64x128xbf16>
    %c0_2 = arith.constant 0 : index
    %c0_3 = arith.constant 0 : index
    %3 = vector.load %arg3[%c0_2, %c0_3] : memref<128x256xbf16, #tpu.memory_space<vmem>>, vector<128x256xbf16>
    %cst = arith.constant dense<0.000000e+00> : vector<64x256xf32>
    %4 = tpu.matmul %2, %3, %cst {dimension_numbers = #tpu.dot_dimension_numbers<[1], [0], [0], [1], [0, 0, 1, 1], [], []>} : vector<64x128xbf16>, vector<128x256xbf16>, vector<64x256xf32> -> vector<64x256xf32>
    %c0_4 = arith.constant 0 : index
    %c0_5 = arith.constant 0 : index
    %5 = vector.load %arg4[%c0_4, %c0_5] : memref<1x256xf32, #tpu.memory_space<vmem>>, vector<1x256xf32>
    %6 = vector.broadcast %5 : vector<1x256xf32> to vector<64x256xf32>
    %7 = arith.addf %4, %6 : vector<64x256xf32>
    %8 = vector.shape_cast %7 : vector<64x256xf32> to vector<8x8x256xf32>
    %c0_6 = arith.constant 0 : index
    %c0_7 = arith.constant 0 : index
    %c0_8 = arith.constant 0 : index
    %9 = vector.load %arg12[%c0_6, %c0_7, %c0_8] : memref<8x8x256xf32, #tpu.memory_space<vmem>>, vector<8x8x256xf32>
    tpu.vector_store %arg12[%c0_6, %c0_7, %c0_8], %8 {strides = array<i32>} : memref<8x8x256xf32, #tpu.memory_space<vmem>>, vector<8x8x256xf32>,
    %c0_9 = arith.constant 0 : index
    %c0_10 = arith.constant 0 : index
    %10 = vector.load %arg7[%c0_9, %c0_10] : memref<4x256xf32, #tpu.memory_space<vmem>>, vector<1x256xf32>
    %11 = vector.shape_cast %10 : vector<1x256xf32> to vector<1x1x256xf32>
    %c0_11 = arith.constant 0 : index
    %c0_12 = arith.constant 0 : index
    %12 = vector.load %arg8[%c0_11, %c0_12] : memref<4x256xf32, #tpu.memory_space<vmem>>, vector<1x256xf32>
    %13 = vector.shape_cast %12 : vector<1x256xf32> to vector<1x1x256xf32>
    %c0_13 = arith.constant 0 : index
    %c0_14 = arith.constant 0 : index
    %c0_15 = arith.constant 0 : index
    %14 = vector.load %arg2[%c0_13, %c0_14, %c0_15] : memref<8x8x1xf32, #tpu.memory_space<vmem>>, vector<1x8x1xf32>
    %15 = vector.shape_cast %14 : vector<1x8x1xf32> to vector<8x1xf32>
    %c0_16 = arith.constant 0 : index
    %c0_17 = arith.constant 0 : index
    %c0_18 = arith.constant 0 : index
    %16 = vector.load %arg12[%c0_16, %c0_17, %c0_18] : memref<8x8x256xf32, #tpu.memory_space<vmem>>, vector<1x8x256xf32>
    %17 = vector.shape_cast %16 : vector<1x8x256xf32> to vector<8x256xf32>
    %18 = vector.broadcast %15 : vector<8x1xf32> to vector<8x256xf32>
    %19 = arith.mulf %17, %18 : vector<8x256xf32>
    %c128_i32 = arith.constant 128 : i32
    %20 = tpu.dynamic_rotate %19 by %c128_i32 dim 1 : vector<8x256xf32>, i32 -> vector<8x256xf32>
    %21 = vector.shape_cast %19 : vector<8x256xf32> to vector<1x8x256xf32>
    %22 = vector.broadcast %11 : vector<1x1x256xf32> to vector<1x8x256xf32>
    %23 = arith.mulf %22, %21 : vector<1x8x256xf32>
    %24 = vector.shape_cast %20 : vector<8x256xf32> to vector<1x8x256xf32>
    %25 = vector.broadcast %13 : vector<1x1x256xf32> to vector<1x8x256xf32>
    %26 = arith.mulf %25, %24 : vector<1x8x256xf32>
    %27 = arith.addf %23, %26 : vector<1x8x256xf32>
    %c1 = arith.constant 1 : index
    %c0_19 = arith.constant 0 : index
    %c0_20 = arith.constant 0 : index
    %28 = vector.load %arg12[%c1, %c0_19, %c0_20] : memref<8x8x256xf32, #tpu.memory_space<vmem>>, vector<1x8x256xf32>
    %29 = arith.addf %28, %27 : vector<1x8x256xf32>
    %c1_21 = arith.constant 1 : index
    %c0_22 = arith.constant 0 : index
    %c0_23 = arith.constant 0 : index
    %30 = vector.load %arg12[%c1_21, %c0_22, %c0_23] : memref<8x8x256xf32, #tpu.memory_space<vmem>>, vector<1x8x256xf32>
    tpu.vector_store %arg12[%c1_21, %c0_22, %c0_23], %29 {strides = array<i32>} : memref<8x8x256xf32, #tpu.memory_space<vmem>>, vector<1x8x256xf32>,
    %c2 = arith.constant 2 : index
    %c0_24 = arith.constant 0 : index
    %c0_25 = arith.constant 0 : index
    %31 = vector.load %arg2[%c2, %c0_24, %c0_25] : memref<8x8x1xf32, #tpu.memory_space<vmem>>, vector<1x8x1xf32>
    %32 = vector.shape_cast %31 : vector<1x8x1xf32> to vector<8x1xf32>
    %c2_26 = arith.constant 2 : index
    %c0_27 = arith.constant 0 : index
    %c0_28 = arith.constant 0 : index
    %33 = vector.load %arg12[%c2_26, %c0_27, %c0_28] : memref<8x8x256xf32, #tpu.memory_space<vmem>>, vector<1x8x256xf32>
    %34 = vector.shape_cast %33 : vector<1x8x256xf32> to vector<8x256xf32>
    %35 = vector.broadcast %32 : vector<8x1xf32> to vector<8x256xf32>
    %36 = arith.mulf %34, %35 : vector<8x256xf32>
    %c128_i32_29 = arith.constant 128 : i32
    %37 = tpu.dynamic_rotate %36 by %c128_i32_29 dim 1 : vector<8x256xf32>, i32 -> vector<8x256xf32>
    %38 = vector.shape_cast %36 : vector<8x256xf32> to vector<1x8x256xf32>
    %39 = vector.broadcast %11 : vector<1x1x256xf32> to vector<1x8x256xf32>
    %40 = arith.mulf %39, %38 : vector<1x8x256xf32>
    %41 = vector.shape_cast %37 : vector<8x256xf32> to vector<1x8x256xf32>
    %42 = vector.broadcast %13 : vector<1x1x256xf32> to vector<1x8x256xf32>
    %43 = arith.mulf %42, %41 : vector<1x8x256xf32>
    %44 = arith.addf %40, %43 : vector<1x8x256xf32>
    %c3 = arith.constant 3 : index
    %c0_30 = arith.constant 0 : index
    %c0_31 = arith.constant 0 : index
    %45 = vector.load %arg12[%c3, %c0_30, %c0_31] : memref<8x8x256xf32, #tpu.memory_space<vmem>>, vector<1x8x256xf32>
    %46 = arith.addf %45, %44 : vector<1x8x256xf32>
    %c3_32 = arith.constant 3 : index
    %c0_33 = arith.constant 0 : index
    %c0_34 = arith.constant 0 : index
    %47 = vector.load %arg12[%c3_32, %c0_33, %c0_34] : memref<8x8x256xf32, #tpu.memory_space<vmem>>, vector<1x8x256xf32>
    tpu.vector_store %arg12[%c3_32, %c0_33, %c0_34], %46 {strides = array<i32>} : memref<8x8x256xf32, #tpu.memory_space<vmem>>, vector<1x8x256xf32>,
    %c4 = arith.constant 4 : index
    %c0_35 = arith.constant 0 : index
    %c0_36 = arith.constant 0 : index
    %48 = vector.load %arg2[%c4, %c0_35, %c0_36] : memref<8x8x1xf32, #tpu.memory_space<vmem>>, vector<1x8x1xf32>
    %49 = vector.shape_cast %48 : vector<1x8x1xf32> to vector<8x1xf32>
    %c4_37 = arith.constant 4 : index
    %c0_38 = arith.constant 0 : index
    %c0_39 = arith.constant 0 : index
    %50 = vector.load %arg12[%c4_37, %c0_38, %c0_39] : memref<8x8x256xf32, #tpu.memory_space<vmem>>, vector<1x8x256xf32>
    %51 = vector.shape_cast %50 : vector<1x8x256xf32> to vector<8x256xf32>
    %52 = vector.broadcast %49 : vector<8x1xf32> to vector<8x256xf32>
    %53 = arith.mulf %51, %52 : vector<8x256xf32>
    %c128_i32_40 = arith.constant 128 : i32
    %54 = tpu.dynamic_rotate %53 by %c128_i32_40 dim 1 : vector<8x256xf32>, i32 -> vector<8x256xf32>
    %55 = vector.shape_cast %53 : vector<8x256xf32> to vector<1x8x256xf32>
    %56 = vector.broadcast %11 : vector<1x1x256xf32> to vector<1x8x256xf32>
    %57 = arith.mulf %56, %55 : vector<1x8x256xf32>
    %58 = vector.shape_cast %54 : vector<8x256xf32> to vector<1x8x256xf32>
    %59 = vector.broadcast %13 : vector<1x1x256xf32> to vector<1x8x256xf32>
    %60 = arith.mulf %59, %58 : vector<1x8x256xf32>
    %61 = arith.addf %57, %60 : vector<1x8x256xf32>
    %c5 = arith.constant 5 : index
    %c0_41 = arith.constant 0 : index
    %c0_42 = arith.constant 0 : index
    %62 = vector.load %arg12[%c5, %c0_41, %c0_42] : memref<8x8x256xf32, #tpu.memory_space<vmem>>, vector<1x8x256xf32>
    %63 = arith.addf %62, %61 : vector<1x8x256xf32>
    %c5_43 = arith.constant 5 : index
    %c0_44 = arith.constant 0 : index
    %c0_45 = arith.constant 0 : index
    %64 = vector.load %arg12[%c5_43, %c0_44, %c0_45] : memref<8x8x256xf32, #tpu.memory_space<vmem>>, vector<1x8x256xf32>
    tpu.vector_store %arg12[%c5_43, %c0_44, %c0_45], %63 {strides = array<i32>} : memref<8x8x256xf32, #tpu.memory_space<vmem>>, vector<1x8x256xf32>,
    %c6 = arith.constant 6 : index
    %c0_46 = arith.constant 0 : index
    %c0_47 = arith.constant 0 : index
    %65 = vector.load %arg2[%c6, %c0_46, %c0_47] : memref<8x8x1xf32, #tpu.memory_space<vmem>>, vector<1x8x1xf32>
    %66 = vector.shape_cast %65 : vector<1x8x1xf32> to vector<8x1xf32>
    %c6_48 = arith.constant 6 : index
    %c0_49 = arith.constant 0 : index
    %c0_50 = arith.constant 0 : index
    %67 = vector.load %arg12[%c6_48, %c0_49, %c0_50] : memref<8x8x256xf32, #tpu.memory_space<vmem>>, vector<1x8x256xf32>
    %68 = vector.shape_cast %67 : vector<1x8x256xf32> to vector<8x256xf32>
    %69 = vector.broadcast %66 : vector<8x1xf32> to vector<8x256xf32>
    %70 = arith.mulf %68, %69 : vector<8x256xf32>
    %c128_i32_51 = arith.constant 128 : i32
    %71 = tpu.dynamic_rotate %70 by %c128_i32_51 dim 1 : vector<8x256xf32>, i32 -> vector<8x256xf32>
    %72 = vector.shape_cast %70 : vector<8x256xf32> to vector<1x8x256xf32>
    %73 = vector.broadcast %11 : vector<1x1x256xf32> to vector<1x8x256xf32>
    %74 = arith.mulf %73, %72 : vector<1x8x256xf32>
    %75 = vector.shape_cast %71 : vector<8x256xf32> to vector<1x8x256xf32>
    %76 = vector.broadcast %13 : vector<1x1x256xf32> to vector<1x8x256xf32>
    %77 = arith.mulf %76, %75 : vector<1x8x256xf32>
    %78 = arith.addf %74, %77 : vector<1x8x256xf32>
    %c7 = arith.constant 7 : index
    %c0_52 = arith.constant 0 : index
    %c0_53 = arith.constant 0 : index
    %79 = vector.load %arg12[%c7, %c0_52, %c0_53] : memref<8x8x256xf32, #tpu.memory_space<vmem>>, vector<1x8x256xf32>
    %80 = arith.addf %79, %78 : vector<1x8x256xf32>
    %c7_54 = arith.constant 7 : index
    %c0_55 = arith.constant 0 : index
    %c0_56 = arith.constant 0 : index
    %81 = vector.load %arg12[%c7_54, %c0_55, %c0_56] : memref<8x8x256xf32, #tpu.memory_space<vmem>>, vector<1x8x256xf32>
    tpu.vector_store %arg12[%c7_54, %c0_55, %c0_56], %80 {strides = array<i32>} : memref<8x8x256xf32, #tpu.memory_space<vmem>>, vector<1x8x256xf32>,
    %c0_57 = arith.constant 0 : index
    %c0_58 = arith.constant 0 : index
    %82 = vector.load %arg7[%c0_57, %c0_58] : memref<4x256xf32, #tpu.memory_space<vmem>>, vector<2x256xf32>
    %83 = vector.shape_cast %82 : vector<2x256xf32> to vector<2x1x256xf32>
    %c0_59 = arith.constant 0 : index
    %c0_60 = arith.constant 0 : index
    %84 = vector.load %arg8[%c0_59, %c0_60] : memref<4x256xf32, #tpu.memory_space<vmem>>, vector<2x256xf32>
    %85 = vector.shape_cast %84 : vector<2x256xf32> to vector<2x1x256xf32>
    %c1_61 = arith.constant 1 : index
    %c0_62 = arith.constant 0 : index
    %c0_63 = arith.constant 0 : index
    %86 = vector.load %arg2[%c1_61, %c0_62, %c0_63] : memref<8x8x1xf32, #tpu.memory_space<vmem>>, vector<1x8x1xf32>
    %87 = vector.shape_cast %86 : vector<1x8x1xf32> to vector<8x1xf32>
    %c1_64 = arith.constant 1 : index
    %c0_65 = arith.constant 0 : index
    %c0_66 = arith.constant 0 : index
    %88 = vector.load %arg12[%c1_64, %c0_65, %c0_66] : memref<8x8x256xf32, #tpu.memory_space<vmem>>, vector<1x8x256xf32>
    %89 = vector.shape_cast %88 : vector<1x8x256xf32> to vector<8x256xf32>
    %90 = vector.broadcast %87 : vector<8x1xf32> to vector<8x256xf32>
    %91 = arith.mulf %89, %90 : vector<8x256xf32>
    %c128_i32_67 = arith.constant 128 : i32
    %92 = tpu.dynamic_rotate %91 by %c128_i32_67 dim 1 : vector<8x256xf32>, i32 -> vector<8x256xf32>
    %93 = vector.shape_cast %91 : vector<8x256xf32> to vector<1x8x256xf32>
    %94 = vector.broadcast %83 : vector<2x1x256xf32> to vector<2x8x256xf32>
    %95 = vector.broadcast %93 : vector<1x8x256xf32> to vector<2x8x256xf32>
    %96 = arith.mulf %94, %95 : vector<2x8x256xf32>
    %97 = vector.shape_cast %92 : vector<8x256xf32> to vector<1x8x256xf32>
    %98 = vector.broadcast %85 : vector<2x1x256xf32> to vector<2x8x256xf32>
    %99 = vector.broadcast %97 : vector<1x8x256xf32> to vector<2x8x256xf32>
    %100 = arith.mulf %98, %99 : vector<2x8x256xf32>
    %101 = arith.addf %96, %100 : vector<2x8x256xf32>
    %c2_68 = arith.constant 2 : index
    %c0_69 = arith.constant 0 : index
    %c0_70 = arith.constant 0 : index
    %102 = vector.load %arg12[%c2_68, %c0_69, %c0_70] : memref<8x8x256xf32, #tpu.memory_space<vmem>>, vector<2x8x256xf32>
    %103 = arith.addf %102, %101 : vector<2x8x256xf32>
    %c2_71 = arith.constant 2 : index
    %c0_72 = arith.constant 0 : index
    %c0_73 = arith.constant 0 : index
    %104 = vector.load %arg12[%c2_71, %c0_72, %c0_73] : memref<8x8x256xf32, #tpu.memory_space<vmem>>, vector<2x8x256xf32>
    tpu.vector_store %arg12[%c2_71, %c0_72, %c0_73], %103 {strides = array<i32>} : memref<8x8x256xf32, #tpu.memory_space<vmem>>, vector<2x8x256xf32>,
    %c5_74 = arith.constant 5 : index
    %c0_75 = arith.constant 0 : index
    %c0_76 = arith.constant 0 : index
    %105 = vector.load %arg2[%c5_74, %c0_75, %c0_76] : memref<8x8x1xf32, #tpu.memory_space<vmem>>, vector<1x8x1xf32>
    %106 = vector.shape_cast %105 : vector<1x8x1xf32> to vector<8x1xf32>
    %c5_77 = arith.constant 5 : index
    %c0_78 = arith.constant 0 : index
    %c0_79 = arith.constant 0 : index
    %107 = vector.load %arg12[%c5_77, %c0_78, %c0_79] : memref<8x8x256xf32, #tpu.memory_space<vmem>>, vector<1x8x256xf32>
    %108 = vector.shape_cast %107 : vector<1x8x256xf32> to vector<8x256xf32>
    %109 = vector.broadcast %106 : vector<8x1xf32> to vector<8x256xf32>
    %110 = arith.mulf %108, %109 : vector<8x256xf32>
    %c128_i32_80 = arith.constant 128 : i32
    %111 = tpu.dynamic_rotate %110 by %c128_i32_80 dim 1 : vector<8x256xf32>, i32 -> vector<8x256xf32>
    %112 = vector.shape_cast %110 : vector<8x256xf32> to vector<1x8x256xf32>
    %113 = vector.broadcast %83 : vector<2x1x256xf32> to vector<2x8x256xf32>
    %114 = vector.broadcast %112 : vector<1x8x256xf32> to vector<2x8x256xf32>
    %115 = arith.mulf %113, %114 : vector<2x8x256xf32>
    %116 = vector.shape_cast %111 : vector<8x256xf32> to vector<1x8x256xf32>
    %117 = vector.broadcast %85 : vector<2x1x256xf32> to vector<2x8x256xf32>
    %118 = vector.broadcast %116 : vector<1x8x256xf32> to vector<2x8x256xf32>
    %119 = arith.mulf %117, %118 : vector<2x8x256xf32>
    %120 = arith.addf %115, %119 : vector<2x8x256xf32>
    %c6_81 = arith.constant 6 : index
    %c0_82 = arith.constant 0 : index
    %c0_83 = arith.constant 0 : index
    %121 = vector.load %arg12[%c6_81, %c0_82, %c0_83] : memref<8x8x256xf32, #tpu.memory_space<vmem>>, vector<2x8x256xf32>
    %122 = arith.addf %121, %120 : vector<2x8x256xf32>
    %c6_84 = arith.constant 6 : index
    %c0_85 = arith.constant 0 : index
    %c0_86 = arith.constant 0 : index
    %123 = vector.load %arg12[%c6_84, %c0_85, %c0_86] : memref<8x8x256xf32, #tpu.memory_space<vmem>>, vector<2x8x256xf32>
    tpu.vector_store %arg12[%c6_84, %c0_85, %c0_86], %122 {strides = array<i32>} : memref<8x8x256xf32, #tpu.memory_space<vmem>>, vector<2x8x256xf32>,
    %c0_87 = arith.constant 0 : index
    %c0_88 = arith.constant 0 : index
    %124 = vector.load %arg7[%c0_87, %c0_88] : memref<4x256xf32, #tpu.memory_space<vmem>>, vector<4x256xf32>
    %125 = vector.shape_cast %124 : vector<4x256xf32> to vector<4x1x256xf32>
    %c0_89 = arith.constant 0 : index
    %c0_90 = arith.constant 0 : index
    %126 = vector.load %arg8[%c0_89, %c0_90] : memref<4x256xf32, #tpu.memory_space<vmem>>, vector<4x256xf32>
    %127 = vector.shape_cast %126 : vector<4x256xf32> to vector<4x1x256xf32>
    %c3_91 = arith.constant 3 : index
    %c0_92 = arith.constant 0 : index
    %c0_93 = arith.constant 0 : index
    %128 = vector.load %arg2[%c3_91, %c0_92, %c0_93] : memref<8x8x1xf32, #tpu.memory_space<vmem>>, vector<1x8x1xf32>
    %129 = vector.shape_cast %128 : vector<1x8x1xf32> to vector<8x1xf32>
    %c3_94 = arith.constant 3 : index
    %c0_95 = arith.constant 0 : index
    %c0_96 = arith.constant 0 : index
    %130 = vector.load %arg12[%c3_94, %c0_95, %c0_96] : memref<8x8x256xf32, #tpu.memory_space<vmem>>, vector<1x8x256xf32>
    %131 = vector.shape_cast %130 : vector<1x8x256xf32> to vector<8x256xf32>
    %132 = vector.broadcast %129 : vector<8x1xf32> to vector<8x256xf32>
    %133 = arith.mulf %131, %132 : vector<8x256xf32>
    %c128_i32_97 = arith.constant 128 : i32
    %134 = tpu.dynamic_rotate %133 by %c128_i32_97 dim 1 : vector<8x256xf32>, i32 -> vector<8x256xf32>
    %135 = vector.shape_cast %133 : vector<8x256xf32> to vector<1x8x256xf32>
    %136 = vector.broadcast %125 : vector<4x1x256xf32> to vector<4x8x256xf32>
    %137 = vector.broadcast %135 : vector<1x8x256xf32> to vector<4x8x256xf32>
    %138 = arith.mulf %136, %137 : vector<4x8x256xf32>
    %139 = vector.shape_cast %134 : vector<8x256xf32> to vector<1x8x256xf32>
    %140 = vector.broadcast %127 : vector<4x1x256xf32> to vector<4x8x256xf32>
    %141 = vector.broadcast %139 : vector<1x8x256xf32> to vector<4x8x256xf32>
    %142 = arith.mulf %140, %141 : vector<4x8x256xf32>
    %143 = arith.addf %138, %142 : vector<4x8x256xf32>
    %c4_98 = arith.constant 4 : index
    %c0_99 = arith.constant 0 : index
    %c0_100 = arith.constant 0 : index
    %144 = vector.load %arg12[%c4_98, %c0_99, %c0_100] : memref<8x8x256xf32, #tpu.memory_space<vmem>>, vector<4x8x256xf32>
    %145 = arith.addf %144, %143 : vector<4x8x256xf32>
    %c4_101 = arith.constant 4 : index
    %c0_102 = arith.constant 0 : index
    %c0_103 = arith.constant 0 : index
    %146 = vector.load %arg12[%c4_101, %c0_102, %c0_103] : memref<8x8x256xf32, #tpu.memory_space<vmem>>, vector<4x8x256xf32>
    tpu.vector_store %arg12[%c4_101, %c0_102, %c0_103], %145 {strides = array<i32>} : memref<8x8x256xf32, #tpu.memory_space<vmem>>, vector<4x8x256xf32>,
    %c0_104 = arith.constant 0 : index
    %c0_105 = arith.constant 0 : index
    %c0_106 = arith.constant 0 : index
    %147 = vector.load %arg12[%c0_104, %c0_105, %c0_106] : memref<8x8x256xf32, #tpu.memory_space<vmem>>, vector<8x8x256xf32>
    %148 = vector.shape_cast %147 : vector<8x8x256xf32> to vector<64x256xf32>
    %149 = arith.truncf %148 : vector<64x256xf32> to vector<64x256xbf16>
    %c0_107 = arith.constant 0 : index
    %c0_108 = arith.constant 0 : index
    %150 = vector.load %arg5[%c0_107, %c0_108] : memref<256x128xbf16, #tpu.memory_space<vmem>>, vector<256x128xbf16>
    %cst_109 = arith.constant dense<0.000000e+00> : vector<64x128xf32>
    %151 = tpu.matmul %149, %150, %cst_109 {dimension_numbers = #tpu.dot_dimension_numbers<[1], [0], [0], [1], [0, 0, 1, 1], [], []>} : vector<64x256xbf16>, vector<256x128xbf16>, vector<64x128xf32> -> vector<64x128xf32>
    %c0_110 = arith.constant 0 : index
    %c0_111 = arith.constant 0 : index
    %152 = vector.load %arg6[%c0_110, %c0_111] : memref<1x128xf32, #tpu.memory_space<vmem>>, vector<1x128xf32>
    %153 = vector.broadcast %152 : vector<1x128xf32> to vector<64x128xf32>
    %154 = arith.addf %151, %153 : vector<64x128xf32>
    %155 = arith.addf %154, %1 : vector<64x128xf32>
    %cst_112 = arith.constant dense<0.000000e+00> : vector<64xf32>
    %156 = vector.multi_reduction <add>, %155, %cst_112 [1] : vector<64x128xf32> to vector<64xf32>
    %157 = vector.shape_cast %156 : vector<64xf32> to vector<64x1xf32>
    %158 = arith.mulf %155, %155 : vector<64x128xf32>
    %cst_113 = arith.constant dense<0.000000e+00> : vector<64xf32>
    %159 = vector.multi_reduction <add>, %158, %cst_113 [1] : vector<64x128xf32> to vector<64xf32>
    %160 = vector.shape_cast %159 : vector<64xf32> to vector<64x1xf32>
    %cst_114 = arith.constant 6.250000e-02 : f32
    %161 = vector.broadcast %cst_114 : f32 to vector<64x1xf32>
    %162 = arith.mulf %157, %161 : vector<64x1xf32>
    %cst_115 = arith.constant 6.250000e-02 : f32
    %163 = vector.broadcast %cst_115 : f32 to vector<64x1xf32>
    %164 = arith.mulf %160, %163 : vector<64x1xf32>
    %165 = arith.mulf %162, %162 : vector<64x1xf32>
    %166 = arith.subf %164, %165 : vector<64x1xf32>
    %cst_116 = arith.constant 0.000000e+00 : f32
    %167 = vector.broadcast %cst_116 : f32 to vector<64x1xf32>
    %168 = arith.maximumf %166, %167 : vector<64x1xf32>
    %169 = vector.broadcast %162 : vector<64x1xf32> to vector<64x128xf32>
    %170 = arith.subf %155, %169 : vector<64x128xf32>
    %cst_117 = arith.constant 9.99999974E-6 : f32
    %171 = vector.broadcast %cst_117 : f32 to vector<64x1xf32>
    %172 = arith.addf %168, %171 : vector<64x1xf32>
    %173 = math.rsqrt %172 : vector<64x1xf32>
    %174 = vector.broadcast %173 : vector<64x1xf32> to vector<64x128xf32>
    %175 = arith.mulf %170, %174 : vector<64x128xf32>
    %c0_118 = arith.constant 0 : index
    %c0_119 = arith.constant 0 : index
    %176 = vector.load %arg9[%c0_118, %c0_119] : memref<1x128xf32, #tpu.memory_space<vmem>>, vector<1x128xf32>
    %177 = vector.broadcast %176 : vector<1x128xf32> to vector<64x128xf32>
    %178 = arith.mulf %175, %177 : vector<64x128xf32>
    %c0_120 = arith.constant 0 : index
    %c0_121 = arith.constant 0 : index
    %179 = vector.load %arg10[%c0_120, %c0_121] : memref<1x128xf32, #tpu.memory_space<vmem>>, vector<1x128xf32>
    %180 = vector.broadcast %179 : vector<1x128xf32> to vector<64x128xf32>
    %181 = arith.addf %178, %180 : vector<64x128xf32>
    %182 = vector.shape_cast %181 : vector<64x128xf32> to vector<8x8x128xf32>
    %c0_122 = arith.constant 0 : index
    %c0_123 = arith.constant 0 : index
    %c0_124 = arith.constant 0 : index
    %183 = vector.load %arg11[%c0_122, %c0_123, %c0_124] : memref<8x8x128xf32, #tpu.memory_space<vmem>>, vector<8x8x128xf32>
    tpu.vector_store %arg11[%c0_122, %c0_123, %c0_124], %182 {strides = array<i32>} : memref<8x8x128xf32, #tpu.memory_space<vmem>>, vector<8x8x128xf32>,
    return
  }
  func.func @transform_0(%arg0: i32) -> (i32, i32, i32) {
    %c0_i32 = arith.constant 0 : i32
    %c0_i32_0 = arith.constant 0 : i32
    %c0_i32_1 = arith.constant 0 : i32
    return %c0_i32, %arg0, %c0_i32_0 : i32, i32, i32
  }
  func.func @transform_1(%arg0: i32) -> (i32, i32, i32) {
    %c0_i32 = arith.constant 0 : i32
    %c0_i32_0 = arith.constant 0 : i32
    %c0_i32_1 = arith.constant 0 : i32
    return %c0_i32, %arg0, %c0_i32_0 : i32, i32, i32
  }
  func.func @transform_2(%arg0: i32) -> (i32, i32) {
    %c0_i32 = arith.constant 0 : i32
    %c0_i32_0 = arith.constant 0 : i32
    %c0_i32_1 = arith.constant 0 : i32
    return %c0_i32, %c0_i32_0 : i32, i32
  }
  func.func @transform_3(%arg0: i32) -> (i32, i32) {
    %c0_i32 = arith.constant 0 : i32
    %c0_i32_0 = arith.constant 0 : i32
    %c0_i32_1 = arith.constant 0 : i32
    return %c0_i32, %c0_i32_0 : i32, i32
  }
  func.func @transform_4(%arg0: i32) -> (i32, i32) {
    %c0_i32 = arith.constant 0 : i32
    %c0_i32_0 = arith.constant 0 : i32
    %c0_i32_1 = arith.constant 0 : i32
    return %c0_i32, %c0_i32_0 : i32, i32
  }
  func.func @transform_5(%arg0: i32) -> (i32, i32) {
    %c0_i32 = arith.constant 0 : i32
    %c0_i32_0 = arith.constant 0 : i32
    %c0_i32_1 = arith.constant 0 : i32
    return %c0_i32, %c0_i32_0 : i32, i32
  }
  func.func @transform_6(%arg0: i32) -> (i32, i32) {
    %c0_i32 = arith.constant 0 : i32
    %c0_i32_0 = arith.constant 0 : i32
    %c0_i32_1 = arith.constant 0 : i32
    return %c0_i32, %c0_i32_0 : i32, i32
  }
  func.func @transform_7(%arg0: i32) -> (i32, i32) {
    %c0_i32 = arith.constant 0 : i32
    %c0_i32_0 = arith.constant 0 : i32
    %c0_i32_1 = arith.constant 0 : i32
    return %c0_i32, %c0_i32_0 : i32, i32
  }
  func.func @transform_8(%arg0: i32) -> (i32, i32) {
    %c0_i32 = arith.constant 0 : i32
    %c0_i32_0 = arith.constant 0 : i32
    %c0_i32_1 = arith.constant 0 : i32
    return %c0_i32, %c0_i32_0 : i32, i32
  }
  func.func @transform_9(%arg0: i32) -> (i32, i32) {
    %c0_i32 = arith.constant 0 : i32
    %c0_i32_0 = arith.constant 0 : i32
    %c0_i32_1 = arith.constant 0 : i32
    return %c0_i32, %c0_i32_0 : i32, i32
  }
  func.func @transform_10(%arg0: i32) -> (i32, i32, i32) {
    %c0_i32 = arith.constant 0 : i32
    %c0_i32_0 = arith.constant 0 : i32
    %c0_i32_1 = arith.constant 0 : i32
    return %c0_i32, %arg0, %c0_i32_0 : i32, i32, i32
  }
}

</mosaic_0001>

<bundles_post_ra>
// kernel: tpu_custom_call.1
= control target key start
LH: loop header
LB: loop body
LE: loop exit
PB: predicated region body
PF: predicated region fallthrough
CT: control target
= control target key end

     0   :  { %15 = vsyncpa [#allocation4], 0  ;;  %s1882_s0 = inlined_call_operand.vmem [shape: f32[8,8,128], index: 0, kind: input, shape index: {}]   ;;  %s1883_s1 = inlined_call_operand.vmem [shape: f32[8,8,1], index: 1, kind: input, shape index: {}]   ;;  %s1884_s2 = inlined_call_operand.hbm [shape: bf16[128,256], index: 2, kind: input, shape index: {}]   ;;  %s1885_s3 = inlined_call_operand.vmem [shape: f32[1,256], index: 3, kind: input, shape index: {}]   ;;  %s1886_s4 = inlined_call_operand.hbm [shape: bf16[256,128], index: 4, kind: input, shape index: {}]   ;;  %s1887_s5 = inlined_call_operand.vmem [shape: f32[1,128], index: 5, kind: input, shape index: {}]   ;;  %s1888_s6 = inlined_call_operand.vmem [shape: f32[4,256], index: 6, kind: input, shape index: {}]   ;;  %s1889_s7 = inlined_call_operand.vmem [shape: f32[4,256], index: 7, kind: input, shape index: {}]   ;;  %s1890_s8 = inlined_call_operand.vmem [shape: f32[1,128], index: 8, kind: input, shape index: {}]   ;;  %s1891_s9 = inlined_call_operand.vmem [shape: f32[1,128], index: 9, kind: input, shape index: {}]   ;;  %s1892_s10 = inlined_call_operand.hbm [shape: f32[8,8,128], index: 10, kind: output, shape index: {}]  }
   0x1   :  { %16 = vsyncpa [#allocation7], 0 }
   0x2   :  { %17 = vsyncpa [#allocation5], 0  ;;  %s1369_s13 = smov [#allocation3]   ;;  %s1297_s17 = scalar_lea.hbm %s1884_s2, 2048 }
   0x3   :  { %s27_s14 = sshll.u32 %s1369_s13, 4  ;;  %p1298_p0 = scmp.ne.s32.totalorder %s1884_s2, %s1297_s17  ;;  %s28_s14 = int_to_ptr.vmem [resolvable:$true] %s27_s14 }
   0x4   :  { %p1301_p1 = scmp.lt.u32.totalorder %s1297_s17, %s1884_s2 }
   0x6   :  { %p1303_p2 = pnand %p1301_p1, %p1298_p0 }
   0x8   :  { %1306 = shalt.err (!%p1303_p2)
}
   0x9   :  { %s1307_s22 = scalar_lea.vmem %s28_s14, 2048  ;;  %p1312_p4 = scmp.lt.s32.totalorder %s28_s14, %s28_s14 }
   0xa   :  { %p1308_p3 = scmp.ne.s32.totalorder %s28_s14, %s1307_s22  ;;  %p1313_p5 = scmp.lt.s32.totalorder %s1307_s22, %s1307_s22 }
   0xc   :  { %p1314_p6 = por %p1313_p5, %p1312_p4 }
   0xe   :  { %p1315_p7 = pnand %p1314_p6, %p1308_p3 }
  0x10   :  { %1318 = shalt.err (!%p1315_p7)
}
  0x11   :  { %s1370_s23 = smov 128   ;;  %s1371_s24 = smov 8  }
  0x12   :  { %33 = dma.hbm_to_vmem [thread:$0]  %s1884_s2, 2048, %s28_s14, [#allocation4], %s1370_s23, %s1370_s23, %s1371_s24  }
  0x13   :  { %s1372_s27 = smov [#allocation6]   ;;  %s1319_s11 = scalar_lea.hbm %s1886_s4, 2048 }
  0x14   :  { %s41_s28 = sshll.u32 %s1372_s27, 4  ;;  %p1320_p8 = scmp.ne.s32.totalorder %s1886_s4, %s1319_s11  ;;  %s42_s28 = int_to_ptr.vmem [resolvable:$true] %s41_s28 }
  0x15   :  { %p1323_p9 = scmp.lt.u32.totalorder %s1319_s11, %s1886_s4 }
  0x17   :  { %p1325_p10 = pnand %p1323_p9, %p1320_p8 }
  0x19   :  { %1328 = shalt.err (!%p1325_p10)
}
  0x1a   :  { %s1329_s17 = scalar_lea.vmem %s42_s28, 2048  ;;  %p1334_p12 = scmp.lt.s32.totalorder %s42_s28, %s42_s28 }
  0x1b   :  { %p1330_p11 = scmp.ne.s32.totalorder %s42_s28, %s1329_s17  ;;  %p1335_p13 = scmp.lt.s32.totalorder %s1329_s17, %s1329_s17 }
  0x1d   :  { %p1336_p0 = por %p1335_p13, %p1334_p12 }
  0x1f   :  { %p1337_p1 = pnand %p1336_p0, %p1330_p11 }
  0x21   :  { %1340 = shalt.err (!%p1337_p1)
}
  0x22   :  { %s1373_s2 = smov 64   ;;  %s1374_s14 = smov 4  }
  0x23   :  { %47 = dma.hbm_to_vmem [thread:$0]  %s1886_s4, 2048, %s42_s28, [#allocation7], %s1373_s2, %s1373_s2, %s1374_s14  }
  0x24   :  { %1363 = dma.done.wait [#allocation4], 2048  }
  0x25   :  { %1364 = vsyncadd [#allocation4], 4294965248 }
  0x26   :  { %1365 = dma.done.wait [#allocation7], 2048  }
  0x27   :  { %1366 = vsyncadd [#allocation7], 4294965248  ;;  %v1375_v0 = vmov 0   ;;  %v1241_v1 = vld [vmem:[#allocation3 + $0x4] ss:$8 sps:$4 sm:$0xff]   ;;  %v1161_v14 = vld [vmem:[%s1883_s1 + $0x10] sm:$0xff]  ;;  %v95_v54 = vlaneseq }
  0x28   :  { %217 = vmatprep.mubr.bf16.mxu0 %v1375_v0  ;;  %1239 = vset.pattern.permute.xlu0 %v1375_v0  ;;  %v1243_v2 = vld [vmem:[#allocation3] ss:$8 sps:$4 sm:$0xff]   ;;  %v1244_v3 = vld [vmem:[#allocation3 + $0x14] ss:$8 sps:$4 sm:$0xff]   ;;  %v1246_v4 = vld [vmem:[#allocation3 + $0x10] ss:$8 sps:$4 sm:$0xff]  }
  0x29   :  { %1240 = vset.pattern.permute.xlu1 %v1375_v0  ;;  %185 = vmatprep.subr.bf16.mxu0 %v1241_v1  ;;  %v1247_v5 = vld [vmem:[#allocation3 + $0x24] ss:$8 sps:$4 sm:$0xff]   ;;  %v1249_v6 = vld [vmem:[#allocation3 + $0x20] ss:$8 sps:$4 sm:$0xff]   ;;  %v1250_v7 = vld [vmem:[#allocation3 + $0x34] ss:$8 sps:$4 sm:$0xff]  }
  0x2a   :  { %186 = vmatpush1.bf16.msra.mxu0 %v1243_v2  ;;  %v1252_v8 = vld [vmem:[#allocation3 + $0x30] ss:$8 sps:$4 sm:$0xff]   ;;  %v1253_v9 = vld [vmem:[#allocation3 + $0x44] ss:$8 sps:$4 sm:$0xff]   ;;  %v1255_v11 = vld [vmem:[#allocation3 + $0x40] ss:$8 sps:$4 sm:$0xff]  }
  0x2b   :  { %187 = vmatprep.subr.bf16.mxu0 %v1244_v3  ;;  %v276_v10 = vld [vmem:[%s1883_s1] sm:$0xff]  ;;  %v1256_v12 = vld [vmem:[#allocation3 + $0x54] ss:$8 sps:$4 sm:$0xff]   ;;  %v1166_v13 = vld [vmem:[%s1883_s1 + $0x8] sm:$0xff]  ;;  %v1376_v52 = vmov 1966171168  }
  0x2c   :  { %281 = vperm.xlu0 %1239, %v276_v10   ;;  %450 = vperm.xlu1 %1240, %v1166_v13   ;;  %v1162_v15 = vld [vmem:[%s1883_s1 + $0x20] sm:$0xff]  ;;  %v1258_v17 = vld [vmem:[#allocation3 + $0x50] ss:$8 sps:$4 sm:$0xff]   ;;  %v1267_v21 = vld [vmem:[#allocation6 + $0x48] sm:$0xff]   ;;  %v407_v53 = vunpack.c.l.s4 %v1376_v52  ;;  %v96_v56 = vshrl.u32 %v95_v54, 7 }
  0x2d   :  { %v1265_v16 = vld [vmem:[#allocation6 + $0x40] sm:$0xff]   ;;  %v1170_v18 = vld [vmem:[%s1883_s1 + $0x18] sm:$0xff]  ;;  %v1163_v22 = vld [vmem:[%s1883_s1 + $0x30] sm:$0xff] }
  0x2e   :  { %188 = vmatpush1.bf16.msra.mxu0 %v1246_v4  ;;  %v1266_v19 = vld [vmem:[#allocation6] sm:$0xff]   ;;  %1190 = vmatprep.subr.bf16.mxu1 %v1265_v16  ;;  %v1268_v23 = vld [vmem:[#allocation6 + $0x8] sm:$0xff]   ;;  %v1269_v25 = vld [vmem:[#allocation6 + $0x50] sm:$0xff]   ;;  %v408_v55 = vunpack.c.0.s8 %v407_v53  ;;  %v1541_v60 = vsub.s32 0, %v96_v56  ;;  %v1546_v62 = vsub.s32 1, %v96_v56 }
  0x2f   :  { %189 = vmatprep.subr.bf16.mxu0 %v1247_v5  ;;  %v1259_v20 = vld [vmem:[#allocation3 + $0x64] ss:$8 sps:$4 sm:$0xff]   ;;  %1191 = vmatpush3.bf16.msra.mxu1 %v1266_v19  ;;  %v1261_v24 = vld [vmem:[#allocation3 + $0x60] ss:$8 sps:$4 sm:$0xff]   ;;  %v1262_v26 = vld [vmem:[#allocation3 + $0x74] ss:$8 sps:$4 sm:$0xff]  }
  0x30   :  { %328 = vperm.xlu0 %1239, %v1161_v14   ;;  %353 = vperm.xlu1 %1240, %v1162_v15   ;;  %v1167_v27 = vld [vmem:[%s1883_s1 + $0x28] sm:$0xff]  ;;  %v1270_v28 = vld [vmem:[#allocation6 + $0x10] sm:$0xff]   ;;  %v1271_v29 = vld [vmem:[#allocation6 + $0x58] sm:$0xff]   ;;  %v411_v59 = vsub.s32 %v408_v55, %v96_v56 }
  0x31   :  { %1192 = vmatprep.subr.bf16.mxu1 %v1267_v21  ;;  %v1264_v30 = vld [vmem:[#allocation3 + $0x70] ss:$8 sps:$4 sm:$0xff]   ;;  %v1487_v31 = vld [vmem:[%s1882_s0] sm:$0xff]  ;;  %v1492_v32 = vld [vmem:[%s1882_s0 + $0x8] sm:$0xff] }
  0x32   :  { %190 = vmatpush1.bf16.msra.mxu0 %v1249_v6  ;;  %v1272_v33 = vld [vmem:[#allocation6 + $0x18] sm:$0xff]   ;;  %v1273_v34 = vld [vmem:[#allocation6 + $0x60] sm:$0xff]   ;;  %v73_v35 = vpack.c.bf16 %v1492_v32, %v1487_v31  ;;  %v1500_v36 = vld [vmem:[%s1882_s0 + $0x10] sm:$0xff] }
  0x33   :  { %191 = vmatprep.subr.bf16.mxu0 %v1250_v7  ;;  %1193 = vmatpush3.bf16.msra.mxu1 %v1268_v23  ;;  %v1505_v37 = vld [vmem:[%s1882_s0 + $0x18] sm:$0xff]  ;;  %v1513_v39 = vld [vmem:[%s1882_s0 + $0x20] sm:$0xff]  ;;  %v1518_v40 = vld [vmem:[%s1882_s0 + $0x28] sm:$0xff] }
  0x34   :  { %612 = vperm.xlu0 %1239, %v1170_v18   ;;  %378 = vperm.xlu1 %1240, %v1163_v22   ;;  %v74_v38 = vpack.c.bf16 %v1505_v37, %v1500_v36  ;;  %v75_v41 = vpack.c.bf16 %v1518_v40, %v1513_v39  ;;  %v1526_v42 = vld [vmem:[%s1882_s0 + $0x30] sm:$0xff]  ;;  %v1531_v43 = vld [vmem:[%s1882_s0 + $0x38] sm:$0xff]  ;;  %v1274_v45 = vld [vmem:[#allocation6 + $0x20] sm:$0xff]  }
  0x35   :  { %1194 = vmatprep.subr.bf16.mxu1 %v1269_v25  ;;  %v76_v44 = vpack.c.bf16 %v1531_v43, %v1526_v42  ;;  %v1275_v46 = vld [vmem:[#allocation6 + $0x68] sm:$0xff]   ;;  %v1277_v48 = vld [vmem:[#allocation6 + $0x70] sm:$0xff]   ;;  %v1279_v50 = vld [vmem:[#allocation6 + $0x78] sm:$0xff]  }
  0x36   :  { %192 = vmatpush1.bf16.msra.mxu0 %v1252_v8  ;;  %v1276_v47 = vld [vmem:[#allocation6 + $0x28] sm:$0xff]   ;;  %v1278_v49 = vld [vmem:[#allocation6 + $0x30] sm:$0xff]   ;;  %v1280_v51 = vld [vmem:[#allocation6 + $0x38] sm:$0xff]  }
  0x37   :  { %193 = vmatprep.subr.bf16.mxu0 %v1253_v9  ;;  %1195 = vmatpush3.bf16.msra.mxu1 %v1270_v28  ;;  %v1164_v57 = vld.sshfl [vmem:[%s1888_s6] sm:$0x55 pattern:$0x75316420] }
  0x38   :  { %525 = vperm.xlu0 %1239, %v1167_v27   ;;  %1196 = vmatprep.subr.bf16.mxu1 %v1271_v29  ;;  %v1165_v58 = vld.sshfl [vmem:[%s1889_s7] sm:$0x55 pattern:$0x75316420]  ;;  %v405_v63 = vcombine.high %v1164_v57, %v1164_v57  ;;  %v412_v3 = vrot.slane %v1164_v57, %v411_v59 }
  0x39   :  { %v93_v61 = vld [vmem:[%s1885_s3] sm:$0x3]  ;;  %v436_v6 = vrot.slane %v1165_v58, %v411_v59 }
  0x3a   :  { %194 = vmatpush1.bf16.msra.mxu0 %v1255_v11  ;;  %v274_v1 = vld [vmem:[%s1888_s6] ss:$4 sm:$0x3]  ;;  %v1558_v5 = vrot.slane %v93_v61, %v1541_v60  ;;  %v1564_v8 = vrot.slane %v93_v61, %v1546_v62  ;;  %v419_v9 = vrot.slane %v405_v63, %v411_v59  ;;  %v1590_v23 = vrot.slane %v412_v3, %v1546_v62 }
  0x3b   :  { %195 = vmatprep.subr.bf16.mxu0 %v1256_v12  ;;  %1197 = vmatpush3.bf16.msra.mxu1 %v1272_v33  ;;  %v275_v2 = vld [vmem:[%s1889_s7] ss:$4 sm:$0x3]  ;;  %v1567_v11 = vrot.slane %v274_v1, %v1541_v60  ;;  %v1573_v13 = vrot.slane %v274_v1, %v1546_v62  ;;  %v1587_v22 = vrot.slane %v436_v6, %v1541_v60 }
  0x3c   :  { %1198 = vmatprep.subr.bf16.mxu1 %v1273_v34  ;;  %v1168_v4 = vld.sshfl [vmem:[%s1888_s6] sm:$0xff pattern:$0x75316420]  ;;  %v1570_v12 = vrot.slane %v275_v2, %v1546_v62  ;;  %v1576_v16 = vrot.slane %v275_v2, %v1541_v60  ;;  %v1598_v28 = vrot.slane %v436_v6, %v1546_v62  ;;  %v1601_v29 = vrot.slane %v419_v9, %v1541_v60 }
  0x3d   :  { %v1169_v7 = vld.sshfl [vmem:[%s1889_s7] sm:$0xff pattern:$0x75316420]  ;;  %v563_v14 = vcombine.high %v1168_v4, %v1168_v4  ;;  %v1581_v18 = vrot.slane %v1168_v4, %v411_v59 }
  0x3e   :  { %196 = vmatpush1.bf16.msra.mxu0 %v1258_v17  ;;  %v1579_v17 = vrot.slane %v412_v3, %v1541_v60  ;;  %v589_v19 = vcombine.high %v1169_v7, %v1169_v7 }
  0x3f   :  { %197 = vmatprep.subr.bf16.mxu0 %v1259_v20  ;;  %1199 = vmatpush3.bf16.msra.mxu1 %v1274_v45 }
  0x40   :  { %1200 = vmatprep.subr.bf16.mxu1 %v1275_v46  ;;  %v1618_v46 = vrot.slane %v589_v19, %v411_v59 }
  0x42   :  { %198 = vmatpush1.bf16.msra.mxu0 %v1261_v24  ;;  %v1592_v24 = vrot.slane %v1169_v7, %v411_v59 }
  0x43   :  { %199 = vmatprep.subr.bf16.mxu0 %v1262_v26  ;;  %1201 = vmatpush3.bf16.msra.mxu1 %v1276_v47  ;;  %v1622_v47 = vcombine.high %v1581_v18, %v1581_v18 }
  0x44   :  { %1202 = vmatprep.subr.bf16.mxu1 %v1277_v48 }
  0x46   :  { %200 = vmatpush1.bf16.msra.mxu0 %v1264_v30 }
  0x47   :  { %1203 = vmatpush3.bf16.msra.mxu1 %v1278_v49 }
  0x48   :  { %1204 = vmatprep.subr.bf16.mxu1 %v1279_v50 }
  0x49   :  { %218 = vmatmul.mubr.bf16.vlgmr.msra.gmra.mrb[0].mxu0 %v73_v35  ;;  %v1608_v35 = vrot.slane %v419_v9, %v1546_v62 }
  0x4a   :  { %227 = vmatprep.mubr.bf16.mxu0 %v1375_v0 }
  0x4b   :  { %1205 = vmatpush3.bf16.msra.mxu1 %v1280_v51  ;;  %v1630_v51 = vcombine.high %v1592_v24, %v1592_v24 }
  0x51   :  { %228 = vmatmul.mubr.bf16.gmra.mrb[4].mxu0 %v74_v38 }
  0x52   :  { %237 = vmatprep.mubr.bf16.mxu0 %v1375_v0 }
  0x59   :  { %238 = vmatmul.mubr.bf16.gmra.mrb[8].mxu0 %v75_v41  ;;  %v1613_v41 = vrot.slane %v563_v14, %v411_v59 }
  0x5a   :  { %247 = vmatprep.mubr.bf16.mxu0 %v1375_v0  ;;  %v429_v0 = vcombine.high %v1165_v58, %v1165_v58 }
  0x5b   :  { %v1655_v9 = vcombine.high %v1613_v41, %v1613_v41 }
  0x5c   :  { %v443_v10 = vrot.slane %v429_v0, %v411_v59 }
  0x5e   :  { %v1604_v30 = vrot.slane %v443_v10, %v1541_v60  ;;  %v1611_v38 = vrot.slane %v443_v10, %v1546_v62 }
  0x61   :  { %248 = vmatmul.mubr.bf16.gmra.mrb[12].mxu0 %v76_v44 }
  0xab   :  { %v282_v25 = vpop.permute.xlu0 %281 }
  0xaf   :  { %v329_v10 = vpop.permute.xlu0 %328 }
 0x11c   :  { %v219_v15 = vpop.f32.mrb[0].mxu0 }
 0x11d   :  { %v1584_v20 = vadd.f32 %v219_v15, %v1558_v5  ;;  %v221_v21 = vpop.f32.mrb[1].mxu0 }
 0x11e   :  { %v1595_v26 = vadd.f32 %v221_v21, %v1564_v8  ;;  %v223_v27 = vpop.f32.mrb[2].mxu0 }
 0x11f   :  { %v284_v33 = vmul.f32 %v282_v25, %v1584_v20  ;;  %v225_v34 = vpop.f32.mrb[3].mxu0  ;;  %v224_v61 = vadd.f32 %v223_v27, %v1558_v5  ;;  %v451_v27 = vpop.permute.xlu1 %450 }
 0x120   :  { %v285_v44 = vmul.f32 %v282_v25, %v1595_v26  ;;  %v226_v0 = vadd.f32 %v225_v34, %v1564_v8  ;;  %v1660_v25 = vcombine.high %v1618_v46, %v1618_v46 }
 0x121   :  { %v297_v48 = vmul.f32 %v1567_v11, %v284_v33  ;;  %v311_v49 = vmul.f32 %v1570_v12, %v284_v33 }
 0x122   :  { %v298_v52 = vmul.f32 %v1573_v13, %v285_v44  ;;  %v310_v53 = vmul.f32 %v1576_v16, %v285_v44 }
 0x123   :  { %v354_v55 = vpop.permute.xlu1 %353 }
 0x124   :  { %v312_v63 = vadd.f32 %v310_v53, %v297_v48  ;;  %v313_v1 = vadd.f32 %v311_v49, %v298_v52  ;;  %v229_v2 = vpop.f32.mrb[4].mxu0 }
 0x125   :  { %v230_v3 = vadd.f32 %v229_v2, %v1558_v5  ;;  %v231_v4 = vpop.f32.mrb[5].mxu0 }
 0x126   :  { %v317_v14 = vadd.f32 %v312_v63, %v224_v61  ;;  %v318_v15 = vadd.f32 %v313_v1, %v226_v0  ;;  %v232_v19 = vadd.f32 %v231_v4, %v1564_v8  ;;  %v233_v21 = vpop.f32.mrb[6].mxu0 }
 0x127   :  { %v331_v33 = vmul.f32 %v329_v10, %v230_v3  ;;  %v234_v34 = vadd.f32 %v233_v21, %v1558_v5  ;;  %v235_v44 = vpop.f32.mrb[7].mxu0 }
 0x128   :  { %v453_v52 = vmul.f32 %v451_v27, %v317_v14  ;;  %v454_v53 = vmul.f32 %v451_v27, %v318_v15  ;;  %v332_v61 = vmul.f32 %v329_v10, %v232_v19  ;;  %v236_v63 = vadd.f32 %v235_v44, %v1564_v8 }
 0x129   :  { %v333_v0 = vmul.f32 %v331_v33, %v1567_v11  ;;  %v336_v1 = vmul.f32 %v331_v33, %v1570_v12  ;;  %v762_v2 = vpack.c.bf16 %v318_v15, %v1595_v26  ;;  %v761_v4 = vpack.c.bf16 %v317_v14, %v1584_v20 }
 0x12a   :  { %v475_v21 = vmul.f32 %v1579_v17, %v453_v52  ;;  %v499_v48 = vmul.f32 %v1587_v22, %v454_v53  ;;  %v334_v7 = vmul.f32 %v332_v61, %v1573_v13  ;;  %v335_v49 = vmul.f32 %v332_v61, %v1576_v16 }
 0x12b   :  { %v476_v10 = vmul.f32 %v1590_v23, %v454_v53  ;;  %v500_v27 = vmul.f32 %v1598_v28, %v453_v52  ;;  %v477_v44 = vmul.f32 %v1601_v29, %v453_v52  ;;  %v501_v33 = vmul.f32 %v1604_v30, %v454_v53  ;;  %936 = vmatprep.mubr.bf16.mxu1 %v762_v2 }
 0x12c   :  { %v503_v26 = vadd.f32 %v499_v48, %v475_v21  ;;  %v337_v15 = vadd.f32 %v335_v49, %v333_v0  ;;  %v338_v20 = vadd.f32 %v336_v1, %v334_v7  ;;  %v478_v14 = vmul.f32 %v1608_v35, %v454_v53  ;;  %937 = vmatmul.mubr.bf16.vlgmr.msra.gmra.mrb[0].mxu1 %v761_v4  ;;  %v239_v6 = vpop.f32.mrb[8].mxu0 }
 0x12d   :  { %v504_v59 = vadd.f32 %v500_v27, %v476_v10  ;;  %v505_v58 = vadd.f32 %v501_v33, %v477_v44  ;;  %v502_v61 = vmul.f32 %v1611_v38, %v453_v52  ;;  %v240_v57 = vadd.f32 %v239_v6, %v1558_v5  ;;  %v241_v54 = vpop.f32.mrb[9].mxu0 }
 0x12e   :  { %v511_v50 = vadd.f32 %v503_v26, %v230_v3  ;;  %v342_v56 = vadd.f32 %v337_v15, %v234_v34  ;;  %v343_v45 = vadd.f32 %v338_v20, %v236_v63  ;;  %v242_v2 = vadd.f32 %v241_v54, %v1564_v8  ;;  %v243_v48 = vpop.f32.mrb[10].mxu0  ;;  %v613_v34 = vpop.permute.xlu0 %612 }
 0x12f   :  { %v512_v49 = vadd.f32 %v504_v59, %v232_v19  ;;  %v506_v7 = vadd.f32 %v502_v61, %v478_v14  ;;  %v356_v0 = vmul.f32 %v354_v55, %v240_v57  ;;  %v245_v53 = vpop.f32.mrb[11].mxu0  ;;  %v244_v27 = vadd.f32 %v243_v48, %v1558_v5 }
 0x130   :  { %v513_v4 = vadd.f32 %v505_v58, %v342_v56  ;;  %v357_v21 = vmul.f32 %v354_v55, %v242_v2  ;;  %v1893_v33 = vrot.slane %v1581_v18, %v1541_v60  ;;  %v1894_v15 = vrot.slane %v1592_v24, %v1546_v62 }
 0x131   :  { %v514_v52 = vadd.f32 %v506_v7, %v343_v45  ;;  %v358_v54 = vmul.f32 %v356_v0, %v1567_v11  ;;  %v361_v59 = vmul.f32 %v356_v0, %v1570_v12  ;;  %v246_v45 = vadd.f32 %v245_v53, %v1564_v8 }
 0x132   :  { %v1694_v63 = vmul.f32 %v613_v34, %v513_v4  ;;  %v359_v56 = vmul.f32 %v357_v21, %v1573_v13  ;;  %v360_v55 = vmul.f32 %v357_v21, %v1576_v16  ;;  %v763_v58 = vpack.c.bf16 %v513_v4, %v511_v50 }
 0x133   :  { %v1698_v10 = vmul.f32 %v613_v34, %v514_v52  ;;  %v764_v44 = vpack.c.bf16 %v514_v52, %v512_v49  ;;  %v1895_v50 = vrot.slane %v1613_v41, %v1541_v60  ;;  %v1896_v49 = vrot.slane %v1592_v24, %v1541_v60 }
 0x134   :  { %v657_v26 = vmul.f32 %v1893_v33, %v1694_v63  ;;  %v706_v20 = vmul.f32 %v1894_v15, %v1694_v63  ;;  %v362_v14 = vadd.f32 %v360_v55, %v358_v54  ;;  %v249_v48 = vpop.f32.mrb[12].mxu0  ;;  %v1897_v0 = vrot.slane %v1581_v18, %v1546_v62  ;;  %v379_v54 = vpop.permute.xlu1 %378 }
 0x135   :  { %v659_v61 = vmul.f32 %v1895_v50, %v1694_v63  ;;  %v705_v7 = vmul.f32 %v1896_v49, %v1698_v10  ;;  %v1898_v4 = vrot.slane %v1618_v46, %v1541_v60  ;;  %v363_v34 = vadd.f32 %v361_v59, %v359_v56  ;;  %944 = vmatprep.mubr.bf16.mxu1 %v764_v44  ;;  %v251_v52 = vpop.f32.mrb[13].mxu0 }
 0x136   :  { %v658_v53 = vmul.f32 %v1897_v0, %v1698_v10  ;;  %v367_v55 = vadd.f32 %v362_v14, %v244_v27  ;;  %v1899_v24 = vrot.slane %v1613_v41, %v1546_v62  ;;  %v1900_v18 = vrot.slane %v1618_v46, %v1546_v62  ;;  %945 = vmatmul.mubr.bf16.gmra.mrb[4].mxu1 %v763_v58  ;;  %v253_v49 = vpop.f32.mrb[14].mxu0  ;;  %v526_v0 = vpop.permute.xlu0 %525 }
 0x137   :  { %v707_v21 = vmul.f32 %v1898_v4, %v1698_v10  ;;  %v250_v50 = vadd.f32 %v249_v48, %v1558_v5  ;;  %v713_v59 = vadd.f32 %v705_v7, %v657_v26  ;;  %v368_v4 = vadd.f32 %v363_v34, %v246_v45  ;;  %v255_v27 = vpop.f32.mrb[15].mxu0 }
 0x138   :  { %v660_v33 = vmul.f32 %v1899_v24, %v1698_v10  ;;  %v708_v15 = vmul.f32 %v1900_v18, %v1694_v63  ;;  %v714_v56 = vadd.f32 %v706_v20, %v658_v53  ;;  %v528_v14 = vmul.f32 %v526_v0, %v367_v55 }
 0x139   :  { %v715_v44 = vadd.f32 %v707_v21, %v659_v61  ;;  %v381_v3 = vmul.f32 %v379_v54, %v250_v50  ;;  %v1901_v41 = vrot.slane %v1622_v47, %v1541_v60  ;;  %v729_v46 = vadd.f32 %v713_v59, %v240_v57 }
 0x13a   :  { %v716_v19 = vadd.f32 %v708_v15, %v660_v33  ;;  %v730_v18 = vadd.f32 %v714_v56, %v242_v2  ;;  %v529_v48 = vmul.f32 %v526_v0, %v368_v4  ;;  %v530_v45 = vmul.f32 %v528_v14, %v1579_v17 }
 0x13b   :  { %v661_v24 = vmul.f32 %v1901_v41, %v1694_v63  ;;  %v731_v6 = vadd.f32 %v715_v44, %v367_v55  ;;  %v383_v1 = vmul.f32 %v381_v3, %v1567_v11  ;;  %v386_v26 = vmul.f32 %v381_v3, %v1570_v12 }
 0x13c   :  { %v732_v58 = vadd.f32 %v716_v19, %v368_v4  ;;  %v534_v20 = vmul.f32 %v529_v48, %v1587_v22  ;;  %v1902_v61 = vrot.slane %v1630_v51, %v1541_v60  ;;  %v252_v53 = vadd.f32 %v251_v52, %v1564_v8 }
 0x13d   :  { %v531_v57 = vmul.f32 %v529_v48, %v1590_v23  ;;  %v535_v2 = vmul.f32 %v528_v14, %v1598_v28  ;;  %v1903_v11 = vrot.slane %v1622_v47, %v1546_v62  ;;  %v1904_v17 = vrot.slane %v1630_v51, %v1546_v62 }
 0x13e   :  { %v709_v7 = vmul.f32 %v1902_v61, %v1698_v10  ;;  %v254_v3 = vadd.f32 %v253_v49, %v1558_v5  ;;  %v538_v19 = vadd.f32 %v534_v20, %v530_v45  ;;  %v382_v34 = vmul.f32 %v379_v54, %v252_v53 }
 0x13f   :  { %v662_v12 = vmul.f32 %v1903_v11, %v1698_v10  ;;  %v710_v22 = vmul.f32 %v1904_v17, %v1694_v63  ;;  %v532_v52 = vmul.f32 %v528_v14, %v1601_v29  ;;  %v539_v23 = vadd.f32 %v535_v2, %v531_v57 }
 0x140   :  { %v717_v21 = vadd.f32 %v709_v7, %v661_v24  ;;  %v536_v28 = vmul.f32 %v529_v48, %v1604_v30  ;;  %v256_v33 = vadd.f32 %v255_v27, %v1564_v8  ;;  %v546_v47 = vadd.f32 %v538_v19, %v250_v50 }
 0x141   :  { %v718_v55 = vadd.f32 %v710_v22, %v662_v12  ;;  %v384_v15 = vmul.f32 %v382_v34, %v1573_v13  ;;  %v385_v0 = vmul.f32 %v382_v34, %v1576_v16  ;;  %v533_v51 = vmul.f32 %v529_v48, %v1608_v35 }
 0x142   :  { %v547_v59 = vadd.f32 %v539_v23, %v252_v53  ;;  %v540_v5 = vadd.f32 %v536_v28, %v532_v52  ;;  %v537_v49 = vmul.f32 %v528_v14, %v1611_v38  ;;  %v766_v54 = vpack.c.bf16 %v732_v58, %v730_v18 }
 0x143   :  { %v733_v56 = vadd.f32 %v717_v21, %v546_v47  ;;  %v387_v29 = vadd.f32 %v385_v0, %v383_v1  ;;  %v388_v44 = vadd.f32 %v386_v26, %v384_v15  ;;  %v765_v4 = vpack.c.bf16 %v731_v6, %v729_v46 }
 0x144   :  { %v734_v41 = vadd.f32 %v718_v55, %v547_v59  ;;  %v541_v30 = vadd.f32 %v537_v49, %v533_v51  ;;  %952 = vmatprep.mubr.bf16.mxu1 %v766_v54  ;;  %v1905_v8 = vrot.slane %v1655_v9, %v1546_v62  ;;  %v1906_v16 = vrot.slane %v1660_v25, %v1546_v62 }
 0x145   :  { %v392_v50 = vadd.f32 %v387_v29, %v254_v3  ;;  %v393_v38 = vadd.f32 %v388_v44, %v256_v33  ;;  %953 = vmatmul.mubr.bf16.gmra.mrb[8].mxu1 %v765_v4  ;;  %v1907_v1 = vrot.slane %v1655_v9, %v1541_v60  ;;  %v1908_v27 = vrot.slane %v1660_v25, %v1541_v60  ;;  %v1171_v9 = vld [vmem:[%s1887_s5] ss:$0 sm:$0xff] }
 0x146   :  { %v664_v13 = vmul.f32 %v1905_v8, %v1698_v10  ;;  %v712_v35 = vmul.f32 %v1906_v16, %v1694_v63 }
 0x147   :  { %v663_v6 = vmul.f32 %v1907_v1, %v1694_v63  ;;  %v711_v14 = vmul.f32 %v1908_v27, %v1698_v10  ;;  %v548_v46 = vadd.f32 %v540_v5, %v392_v50  ;;  %v549_v18 = vadd.f32 %v541_v30, %v393_v38 }
 0x148   :  { %v720_v24 = vadd.f32 %v712_v35, %v664_v13 }
 0x149   :  { %v719_v48 = vadd.f32 %v711_v14, %v663_v6 }
 0x14a   :  { %v736_v58 = vadd.f32 %v720_v24, %v549_v18 }
 0x14b   :  { %v735_v62 = vadd.f32 %v719_v48, %v548_v46 }
 0x14c   :  { %v768_v26 = vpack.c.bf16 %v736_v58, %v734_v41 }
 0x14d   :  { %v767_v45 = vpack.c.bf16 %v735_v62, %v733_v56 }
 0x14e   :  { %960 = vmatprep.mubr.bf16.mxu1 %v768_v26 }
 0x14f   :  { %961 = vmatmul.mubr.bf16.gmra.mrb[12].mxu1 %v767_v45 }
 0x1ff   :  { %v1206_v20 = vpop.f32.mrb[0].mxu1 }
 0x200   :  { %v1207_v63 = vpop.f32.mrb[1].mxu1 }
 0x201   :  { %v1208_v61 = vadd.f32 %v1207_v63, %v1206_v20  ;;  %v1209_v7 = vpop.f32.mrb[2].mxu1 }
 0x202   :  { %v1210_v60 = vpop.f32.mrb[3].mxu1 }
 0x203   :  { %v939_v25 = vadd.f32 %v1208_v61, %v1171_v9  ;;  %v1211_v10 = vadd.f32 %v1210_v60, %v1209_v7 }
 0x205   :  { %v942_v53 = vadd.f32 %v1211_v10, %v1171_v9  ;;  %v1786_v57 = vadd.f32 %v939_v25, %v1487_v31 }
 0x207   :  { %977 = vadd.xlane.f32.xlu1 %v1786_v57  ;;  %v1790_v2 = vadd.f32 %v942_v53, %v1492_v32  ;;  %v993_v19 = vmul.f32 %v1786_v57, %v1786_v57 }
 0x209   :  { %979 = vadd.xlane.f32.xlu0 %v1790_v2  ;;  %v1212_v11 = vpop.f32.mrb[4].mxu1  ;;  %v994_v12 = vmul.f32 %v1790_v2, %v1790_v2 }
 0x20a   :  { %v1213_v17 = vpop.f32.mrb[5].mxu1 }
 0x20b   :  { %v1214_v22 = vadd.f32 %v1213_v17, %v1212_v11  ;;  %1003 = vadd.xlane.f32.xlu1 %v994_v12  ;;  %v1215_v3 = vpop.f32.mrb[6].mxu1 }
 0x20c   :  { %v1216_v31 = vpop.f32.mrb[7].mxu1 }
 0x20d   :  { %v947_v21 = vadd.f32 %v1214_v22, %v1171_v9  ;;  %v1217_v34 = vadd.f32 %v1216_v31, %v1215_v3  ;;  %1001 = vadd.xlane.f32.xlu0 %v993_v19 }
 0x20f   :  { %v950_v52 = vadd.f32 %v1217_v34, %v1171_v9  ;;  %v1798_v32 = vadd.f32 %v947_v21, %v1500_v36 }
 0x211   :  { %981 = vadd.xlane.f32.xlu0 %v1798_v32  ;;  %v1802_v23 = vadd.f32 %v950_v52, %v1505_v37  ;;  %v995_v55 = vmul.f32 %v1798_v32, %v1798_v32  ;;  %v1837_v52 = vld [vmem:[%s1890_s8] ss:$0 sm:$0xff]  ;;  %s1377_s8 = smov [#allocation8]  }
 0x213   :  { %983 = vadd.xlane.f32.xlu1 %v1802_v23  ;;  %v996_v28 = vmul.f32 %v1802_v23, %v1802_v23 }
 0x215   :  { %1005 = vadd.xlane.f32.xlu0 %v995_v55 }
 0x217   :  { %1007 = vadd.xlane.f32.xlu1 %v996_v28 }
 0x218   :  { %v1218_v33 = vpop.f32.mrb[8].mxu1 }
 0x219   :  { %v1219_v47 = vpop.f32.mrb[9].mxu1 }
 0x21a   :  { %v1220_v15 = vadd.f32 %v1219_v47, %v1218_v33  ;;  %v1221_v36 = vpop.f32.mrb[10].mxu1 }
 0x21b   :  { %v1222_v0 = vpop.f32.mrb[11].mxu1 }
 0x21c   :  { %v955_v51 = vadd.f32 %v1220_v15, %v1171_v9  ;;  %v1223_v59 = vadd.f32 %v1222_v0, %v1221_v36  ;;  %v1843_v0 = vld [vmem:[%s1891_s9] ss:$0 sm:$0xff]  ;;  %s1132_s9 = sshll.u32 %s1377_s8, 4  ;;  %s1133_s9 = int_to_ptr.vmem [resolvable:$true] %s1132_s9 }
 0x21d   :  { %s1341_s22 = scalar_lea.vmem %s1133_s9, 1024  ;;  %p1346_p3 = scmp.lt.s32.totalorder %s1133_s9, %s1133_s9 }
 0x21e   :  { %v958_v5 = vadd.f32 %v1223_v59, %v1171_v9  ;;  %v1810_v37 = vadd.f32 %v955_v51, %v1513_v39  ;;  %p1342_p2 = scmp.ne.s32.totalorder %s1133_s9, %s1341_s22  ;;  %p1347_p4 = scmp.lt.s32.totalorder %s1341_s22, %s1341_s22 }
 0x220   :  { %985 = vadd.xlane.f32.xlu0 %v1810_v37  ;;  %v1814_v49 = vadd.f32 %v958_v5, %v1518_v40  ;;  %v997_v29 = vmul.f32 %v1810_v37, %v1810_v37  ;;  %p1348_p5 = por %p1347_p4, %p1346_p3 }
 0x222   :  { %v1224_v54 = vpop.f32.mrb[12].mxu1  ;;  %987 = vadd.xlane.f32.xlu1 %v1814_v49  ;;  %v998_v39 = vmul.f32 %v1814_v49, %v1814_v49  ;;  %p1349_p6 = pnand %p1348_p5, %p1342_p2 }
 0x223   :  { %v1225_v56 = vpop.f32.mrb[13].mxu1 }
 0x224   :  { %v1226_v44 = vadd.f32 %v1225_v56, %v1224_v54  ;;  %v1227_v4 = vpop.f32.mrb[14].mxu1  ;;  %1009 = vadd.xlane.f32.xlu0 %v997_v29 }
 0x225   :  { %v1228_v41 = vpop.f32.mrb[15].mxu1 }
 0x226   :  { %v963_v30 = vadd.f32 %v1226_v44, %v1171_v9  ;;  %v1229_v8 = vadd.f32 %v1228_v41, %v1227_v4  ;;  %1011 = vadd.xlane.f32.xlu1 %v998_v39 }
 0x228   :  { %v966_v13 = vadd.f32 %v1229_v8, %v1171_v9  ;;  %v1822_v40 = vadd.f32 %v963_v30, %v1526_v42 }
 0x22a   :  { %989 = vadd.xlane.f32.xlu0 %v1822_v40  ;;  %v1826_v16 = vadd.f32 %v966_v13, %v1531_v43  ;;  %v999_v35 = vmul.f32 %v1822_v40, %v1822_v40 }
 0x22c   :  { %991 = vadd.xlane.f32.xlu1 %v1826_v16  ;;  %v1000_v50 = vmul.f32 %v1826_v16, %v1826_v16 }
 0x22e   :  { %1013 = vadd.xlane.f32.xlu0 %v999_v35 }
 0x230   :  { %1015 = vadd.xlane.f32.xlu1 %v1000_v50 }
 0x294   :  { %v978_v38 = vpop.xlane.xlu1 %977 }
 0x295   :  { %v1017_v6 = vmul.f32 0.0625, %v978_v38 }
 0x296   :  { %v980_v1 = vpop.xlane.xlu0 %979 }
 0x297   :  { %v1018_v42 = vmul.f32 0.0625, %v980_v1  ;;  %v1033_v43 = vmul.f32 %v1017_v6, %v1017_v6  ;;  %v1057_v33 = vsub.f32 %v1786_v57, %v1017_v6 }
 0x298   :  { %v1004_v27 = vpop.xlane.xlu1 %1003 }
 0x299   :  { %v1034_v14 = vmul.f32 %v1018_v42, %v1018_v42  ;;  %v1026_v24 = vmul.f32 0.0625, %v1004_v27  ;;  %v1058_v21 = vsub.f32 %v1790_v2, %v1018_v42 }
 0x29a   :  { %v1002_v46 = vpop.xlane.xlu0 %1001 }
 0x29b   :  { %v1042_v18 = vsub.f32 %v1026_v24, %v1034_v14  ;;  %v1025_v48 = vmul.f32 0.0625, %v1002_v46 }
 0x29d   :  { %v1050_v58 = vmax.f32 %v1042_v18, 0.0  ;;  %v1041_v62 = vsub.f32 %v1025_v48, %v1033_v43 }
 0x29e   :  { %v982_v26 = vpop.xlane.xlu0 %981 }
 0x29f   :  { %v1066_v45 = vadd.f32 1e-05, %v1050_v58  ;;  %v1049_v20 = vmax.f32 %v1041_v62, 0.0  ;;  %v1019_v9 = vmul.f32 0.0625, %v982_v26 }
 0x2a0   :  { %v984_v63 = vpop.xlane.xlu1 %983 }
 0x2a1   :  { %1281 = vrsqrt.f32 %v1066_v45  ;;  %v1065_v61 = vadd.f32 1e-05, %v1049_v20  ;;  %v1020_v7 = vmul.f32 0.0625, %v984_v63  ;;  %v1035_v25 = vmul.f32 %v1019_v9, %v1019_v9 }
 0x2a2   :  { %v1006_v60 = vpop.xlane.xlu0 %1005  ;;  %v1059_v13 = vsub.f32 %v1798_v32, %v1019_v9 }
 0x2a3   :  { %1283 = vrsqrt.f32 %v1065_v61  ;;  %v1027_v10 = vmul.f32 0.0625, %v1006_v60  ;;  %v1036_v11 = vmul.f32 %v1020_v7, %v1020_v7  ;;  %v1060_v42 = vsub.f32 %v1802_v23, %v1020_v7 }
 0x2a4   :  { %v1008_v53 = vpop.xlane.xlu1 %1007 }
 0x2a5   :  { %v1043_v12 = vsub.f32 %v1027_v10, %v1035_v25  ;;  %v1028_v17 = vmul.f32 0.0625, %v1008_v53 }
 0x2a7   :  { %v1051_v22 = vmax.f32 %v1043_v12, 0.0  ;;  %v1044_v3 = vsub.f32 %v1028_v17, %v1036_v11 }
 0x2a9   :  { %v1067_v19 = vadd.f32 1e-05, %v1051_v22  ;;  %v1052_v31 = vmax.f32 %v1044_v3, 0.0 }
 0x2ab   :  { %v1282_v34 = vpop.eup %1281  ;;  %1285 = vrsqrt.f32 %v1067_v19  ;;  %v1068_v55 = vadd.f32 1e-05, %v1052_v31 }
 0x2ac   :  { %v1082_v47 = vmul.f32 %v1282_v34, %v1058_v21 }
 0x2ad   :  { %v986_v28 = vpop.xlane.xlu0 %985  ;;  %v1284_v36 = vpop.eup %1283  ;;  %1287 = vrsqrt.f32 %v1068_v55 }
 0x2ae   :  { %v1021_v15 = vmul.f32 0.0625, %v986_v28  ;;  %v1097_v51 = vmul.f32 %v1837_v52, %v1082_v47  ;;  %v1081_v59 = vmul.f32 %v1284_v36, %v1057_v33 }
 0x2af   :  { %v988_v2 = vpop.xlane.xlu1 %987 }
 0x2b0   :  { %v1022_v5 = vmul.f32 0.0625, %v988_v2  ;;  %v1112_v56 = vadd.f32 %v1843_v0, %v1097_v51  ;;  %v1096_v29 = vmul.f32 %v1837_v52, %v1081_v59  ;;  %v1037_v57 = vmul.f32 %v1021_v15, %v1021_v15 }
 0x2b1   :  { %v1010_v54 = vpop.xlane.xlu0 %1009  ;;  %v1061_v12 = vsub.f32 %v1810_v37, %v1021_v15 }
 0x2b2   :  { %v1029_v44 = vmul.f32 0.0625, %v1010_v54  ;;  %1120 = vst [vmem:[#allocation8 + $0x8] sm:$0xff] %v1112_v56  ;;  %v1111_v41 = vadd.f32 %v1843_v0, %v1096_v29  ;;  %v1038_v39 = vmul.f32 %v1022_v5, %v1022_v5  ;;  %v1062_v3 = vsub.f32 %v1814_v49, %v1022_v5 }
 0x2b3   :  { %v1012_v4 = vpop.xlane.xlu1 %1011 }
 0x2b4   :  { %v1045_v30 = vsub.f32 %v1029_v44, %v1037_v57  ;;  %v1030_v8 = vmul.f32 0.0625, %v1012_v4  ;;  %1119 = vst [vmem:[#allocation8] sm:$0xff] %v1111_v41 }
 0x2b5   :  { %v1286_v1 = vpop.eup %1285 }
 0x2b6   :  { %v1053_v35 = vmax.f32 %v1045_v30, 0.0  ;;  %v1046_v50 = vsub.f32 %v1030_v8, %v1038_v39  ;;  %v1083_v27 = vmul.f32 %v1286_v1, %v1059_v13 }
 0x2b7   :  { %v990_v38 = vpop.xlane.xlu0 %989  ;;  %v1288_v43 = vpop.eup %1287 }
 0x2b8   :  { %v1023_v6 = vmul.f32 0.0625, %v990_v38  ;;  %v1069_v14 = vadd.f32 1e-05, %v1053_v35  ;;  %v1054_v24 = vmax.f32 %v1046_v50, 0.0  ;;  %v1098_v48 = vmul.f32 %v1837_v52, %v1083_v27 }
 0x2b9   :  { %v992_v46 = vpop.xlane.xlu1 %991  ;;  %v1084_v58 = vmul.f32 %v1288_v43, %v1060_v42 }
 0x2ba   :  { %v1024_v18 = vmul.f32 0.0625, %v992_v46  ;;  %1289 = vrsqrt.f32 %v1069_v14  ;;  %v1070_v62 = vadd.f32 1e-05, %v1054_v24  ;;  %v1039_v32 = vmul.f32 %v1023_v6, %v1023_v6 }
 0x2bb   :  { %v1014_v26 = vpop.xlane.xlu0 %1013  ;;  %v1113_v20 = vadd.f32 %v1843_v0, %v1098_v48  ;;  %v1099_v9 = vmul.f32 %v1837_v52, %v1084_v58  ;;  %v1063_v37 = vsub.f32 %v1822_v40, %v1023_v6 }
 0x2bc   :  { %v1031_v45 = vmul.f32 0.0625, %v1014_v26  ;;  %1291 = vrsqrt.f32 %v1070_v62  ;;  %v1040_v63 = vmul.f32 %v1024_v18, %v1024_v18  ;;  %v1064_v15 = vsub.f32 %v1826_v16, %v1024_v18 }
 0x2bd   :  { %v1016_v23 = vpop.xlane.xlu1 %1015  ;;  %1121 = vst [vmem:[#allocation8 + $0x10] sm:$0xff] %v1113_v20  ;;  %v1114_v60 = vadd.f32 %v1843_v0, %v1099_v9 }
 0x2be   :  { %v1047_v61 = vsub.f32 %v1031_v45, %v1039_v32  ;;  %v1032_v7 = vmul.f32 0.0625, %v1016_v23 }
 0x2bf   :  { %1122 = vst [vmem:[#allocation8 + $0x18] sm:$0xff] %v1114_v60 }
 0x2c0   :  { %v1055_v25 = vmax.f32 %v1047_v61, 0.0  ;;  %v1048_v10 = vsub.f32 %v1032_v7, %v1040_v63 }
 0x2c2   :  { %v1071_v53 = vadd.f32 1e-05, %v1055_v25  ;;  %v1056_v11 = vmax.f32 %v1048_v10, 0.0 }
 0x2c4   :  { %1293 = vrsqrt.f32 %v1071_v53  ;;  %v1072_v17 = vadd.f32 1e-05, %v1056_v11  ;;  %v1290_v22 = vpop.eup %1289 }
 0x2c5   :  { %v1085_v19 = vmul.f32 %v1290_v22, %v1061_v12 }
 0x2c6   :  { %1295 = vrsqrt.f32 %v1072_v17  ;;  %v1292_v31 = vpop.eup %1291 }
 0x2c7   :  { %v1100_v21 = vmul.f32 %v1837_v52, %v1085_v19  ;;  %v1086_v34 = vmul.f32 %v1292_v31, %v1062_v3 }
 0x2c9   :  { %v1115_v55 = vadd.f32 %v1843_v0, %v1100_v21  ;;  %v1101_v28 = vmul.f32 %v1837_v52, %v1086_v34 }
 0x2cb   :  { %1123 = vst [vmem:[#allocation8 + $0x20] sm:$0xff] %v1115_v55  ;;  %v1116_v33 = vadd.f32 %v1843_v0, %v1101_v28 }
 0x2cd   :  { %1124 = vst [vmem:[#allocation8 + $0x28] sm:$0xff] %v1116_v33 }
 0x2ce   :  { %v1294_v47 = vpop.eup %1293 }
 0x2cf   :  { %v1087_v49 = vmul.f32 %v1294_v47, %v1063_v37 }
 0x2d0   :  { %v1296_v36 = vpop.eup %1295 }
 0x2d1   :  { %v1102_v2 = vmul.f32 %v1837_v52, %v1087_v49  ;;  %v1088_v51 = vmul.f32 %v1296_v36, %v1064_v15 }
 0x2d3   :  { %v1117_v59 = vadd.f32 %v1843_v0, %v1102_v2  ;;  %v1103_v5 = vmul.f32 %v1837_v52, %v1088_v51 }
 0x2d5   :  { %1125 = vst [vmem:[#allocation8 + $0x30] sm:$0xff] %v1117_v59  ;;  %v1118_v54 = vadd.f32 %v1843_v0, %v1103_v5 }
 0x2d7   :  { %1126 = vst [vmem:[#allocation8 + $0x38] sm:$0xff] %v1118_v54 }
 0x2d8   :  { %1352 = shalt.err (!%p1349_p6)
}
 0x2d9   :  { %s1353_s27 = scalar_lea.hbm %s1892_s10, 1024 }
 0x2da   :  { %p1354_p7 = scmp.ne.s32.totalorder %s1892_s10, %s1353_s27  ;;  %p1357_p8 = scmp.lt.u32.totalorder %s1353_s27, %s1892_s10 }
 0x2dc   :  { %p1359_p9 = pnand %p1357_p8, %p1354_p7 }
 0x2de   :  { %1362 = shalt.err (!%p1359_p9)
}
 0x2df   :  { %1138 = dma.vmem_to_hbm [thread:$0]  %s1133_s9, 1024, %s1892_s10, [#allocation5], %s1370_s23, %s1370_s23, %s1371_s24  }
 0x2e0   :  { %1367 = dma.done.wait [#allocation5], 1024  }
 0x2e1   :  { %1368 = vsyncadd [#allocation5], 4294966272 }
 0x2e2   :  { %1142 = vsyncpa [#allocation4], 1 }
 0x2e3   :  { %1143 = vsyncpa [#allocation7], 1 }
 0x2e4   :  { %1144 = vsyncpa [#allocation5], 1 }

// kernel: tpu_custom_call.1
= control target key start
LH: loop header
LB: loop body
LE: loop exit
PB: predicated region body
PF: predicated region fallthrough
CT: control target
= control target key end

     0   :  { %15 = vsyncpa [#allocation4], 0  ;;  %s1882_s0 = inlined_call_operand.vmem [shape: f32[8,8,128], index: 0, kind: input, shape index: {}]   ;;  %s1883_s1 = inlined_call_operand.vmem [shape: f32[8,8,1], index: 1, kind: input, shape index: {}]   ;;  %s1884_s2 = inlined_call_operand.hbm [shape: bf16[128,256], index: 2, kind: input, shape index: {}]   ;;  %s1885_s3 = inlined_call_operand.vmem [shape: f32[1,256], index: 3, kind: input, shape index: {}]   ;;  %s1886_s4 = inlined_call_operand.hbm [shape: bf16[256,128], index: 4, kind: input, shape index: {}]   ;;  %s1887_s5 = inlined_call_operand.vmem [shape: f32[1,128], index: 5, kind: input, shape index: {}]   ;;  %s1888_s6 = inlined_call_operand.vmem [shape: f32[4,256], index: 6, kind: input, shape index: {}]   ;;  %s1889_s7 = inlined_call_operand.vmem [shape: f32[4,256], index: 7, kind: input, shape index: {}]   ;;  %s1890_s8 = inlined_call_operand.vmem [shape: f32[1,128], index: 8, kind: input, shape index: {}]   ;;  %s1891_s9 = inlined_call_operand.vmem [shape: f32[1,128], index: 9, kind: input, shape index: {}]   ;;  %s1892_s10 = inlined_call_operand.hbm [shape: f32[8,8,128], index: 10, kind: output, shape index: {}]  }
   0x1   :  { %16 = vsyncpa [#allocation7], 0 }
   0x2   :  { %17 = vsyncpa [#allocation5], 0  ;;  %s1369_s13 = smov [#allocation3]   ;;  %s1297_s17 = scalar_lea.hbm %s1884_s2, 2048 }
   0x3   :  { %s27_s14 = sshll.u32 %s1369_s13, 4  ;;  %p1298_p0 = scmp.ne.s32.totalorder %s1884_s2, %s1297_s17  ;;  %s28_s14 = int_to_ptr.vmem [resolvable:$true] %s27_s14 }
   0x4   :  { %p1301_p1 = scmp.lt.u32.totalorder %s1297_s17, %s1884_s2 }
   0x6   :  { %p1303_p2 = pnand %p1301_p1, %p1298_p0 }
   0x8   :  { %1306 = shalt.err (!%p1303_p2)
}
   0x9   :  { %s1307_s22 = scalar_lea.vmem %s28_s14, 2048  ;;  %p1312_p4 = scmp.lt.s32.totalorder %s28_s14, %s28_s14 }
   0xa   :  { %p1308_p3 = scmp.ne.s32.totalorder %s28_s14, %s1307_s22  ;;  %p1313_p5 = scmp.lt.s32.totalorder %s1307_s22, %s1307_s22 }
   0xc   :  { %p1314_p6 = por %p1313_p5, %p1312_p4 }
   0xe   :  { %p1315_p7 = pnand %p1314_p6, %p1308_p3 }
  0x10   :  { %1318 = shalt.err (!%p1315_p7)
}
  0x11   :  { %s1370_s23 = smov 128   ;;  %s1371_s24 = smov 8  }
  0x12   :  { %33 = dma.hbm_to_vmem [thread:$0]  %s1884_s2, 2048, %s28_s14, [#allocation4], %s1370_s23, %s1370_s23, %s1371_s24  }
  0x13   :  { %s1372_s27 = smov [#allocation6]   ;;  %s1319_s11 = scalar_lea.hbm %s1886_s4, 2048 }
  0x14   :  { %s41_s28 = sshll.u32 %s1372_s27, 4  ;;  %p1320_p8 = scmp.ne.s32.totalorder %s1886_s4, %s1319_s11  ;;  %s42_s28 = int_to_ptr.vmem [resolvable:$true] %s41_s28 }
  0x15   :  { %p1323_p9 = scmp.lt.u32.totalorder %s1319_s11, %s1886_s4 }
  0x17   :  { %p1325_p10 = pnand %p1323_p9, %p1320_p8 }
  0x19   :  { %1328 = shalt.err (!%p1325_p10)
}
  0x1a   :  { %s1329_s17 = scalar_lea.vmem %s42_s28, 2048  ;;  %p1334_p12 = scmp.lt.s32.totalorder %s42_s28, %s42_s28 }
  0x1b   :  { %p1330_p11 = scmp.ne.s32.totalorder %s42_s28, %s1329_s17  ;;  %p1335_p13 = scmp.lt.s32.totalorder %s1329_s17, %s1329_s17 }
  0x1d   :  { %p1336_p0 = por %p1335_p13, %p1334_p12 }
  0x1f   :  { %p1337_p1 = pnand %p1336_p0, %p1330_p11 }
  0x21   :  { %1340 = shalt.err (!%p1337_p1)
}
  0x22   :  { %s1373_s2 = smov 64   ;;  %s1374_s14 = smov 4  }
  0x23   :  { %47 = dma.hbm_to_vmem [thread:$0]  %s1886_s4, 2048, %s42_s28, [#allocation7], %s1373_s2, %s1373_s2, %s1374_s14  }
  0x24   :  { %1363 = dma.done.wait [#allocation4], 2048  }
  0x25   :  { %1364 = vsyncadd [#allocation4], 4294965248 }
  0x26   :  { %1365 = dma.done.wait [#allocation7], 2048  }
  0x27   :  { %1366 = vsyncadd [#allocation7], 4294965248  ;;  %v1375_v0 = vmov 0   ;;  %v1241_v1 = vld [vmem:[#allocation3 + $0x4] ss:$8 sps:$4 sm:$0xff]   ;;  %v1161_v14 = vld [vmem:[%s1883_s1 + $0x10] sm:$0xff]  ;;  %v95_v54 = vlaneseq }
  0x28   :  { %217 = vmatprep.mubr.bf16.mxu0 %v1375_v0  ;;  %1239 = vset.pattern.permute.xlu0 %v1375_v0  ;;  %v1243_v2 = vld [vmem:[#allocation3] ss:$8 sps:$4 sm:$0xff]   ;;  %v1244_v3 = vld [vmem:[#allocation3 + $0x14] ss:$8 sps:$4 sm:$0xff]   ;;  %v1246_v4 = vld [vmem:[#allocation3 + $0x10] ss:$8 sps:$4 sm:$0xff]  }
  0x29   :  { %1240 = vset.pattern.permute.xlu1 %v1375_v0  ;;  %185 = vmatprep.subr.bf16.mxu0 %v1241_v1  ;;  %v1247_v5 = vld [vmem:[#allocation3 + $0x24] ss:$8 sps:$4 sm:$0xff]   ;;  %v1249_v6 = vld [vmem:[#allocation3 + $0x20] ss:$8 sps:$4 sm:$0xff]   ;;  %v1250_v7 = vld [vmem:[#allocation3 + $0x34] ss:$8 sps:$4 sm:$0xff]  }
  0x2a   :  { %186 = vmatpush1.bf16.msra.mxu0 %v1243_v2  ;;  %v1252_v8 = vld [vmem:[#allocation3 + $0x30] ss:$8 sps:$4 sm:$0xff]   ;;  %v1253_v9 = vld [vmem:[#allocation3 + $0x44] ss:$8 sps:$4 sm:$0xff]   ;;  %v1255_v11 = vld [vmem:[#allocation3 + $0x40] ss:$8 sps:$4 sm:$0xff]  }
  0x2b   :  { %187 = vmatprep.subr.bf16.mxu0 %v1244_v3  ;;  %v276_v10 = vld [vmem:[%s1883_s1] sm:$0xff]  ;;  %v1256_v12 = vld [vmem:[#allocation3 + $0x54] ss:$8 sps:$4 sm:$0xff]   ;;  %v1166_v13 = vld [vmem:[%s1883_s1 + $0x8] sm:$0xff]  ;;  %v1376_v52 = vmov 1966171168  }
  0x2c   :  { %281 = vperm.xlu0 %1239, %v276_v10   ;;  %450 = vperm.xlu1 %1240, %v1166_v13   ;;  %v1162_v15 = vld [vmem:[%s1883_s1 + $0x20] sm:$0xff]  ;;  %v1258_v17 = vld [vmem:[#allocation3 + $0x50] ss:$8 sps:$4 sm:$0xff]   ;;  %v1267_v21 = vld [vmem:[#allocation6 + $0x48] sm:$0xff]   ;;  %v407_v53 = vunpack.c.l.s4 %v1376_v52  ;;  %v96_v56 = vshrl.u32 %v95_v54, 7 }
  0x2d   :  { %v1265_v16 = vld [vmem:[#allocation6 + $0x40] sm:$0xff]   ;;  %v1170_v18 = vld [vmem:[%s1883_s1 + $0x18] sm:$0xff]  ;;  %v1163_v22 = vld [vmem:[%s1883_s1 + $0x30] sm:$0xff] }
  0x2e   :  { %188 = vmatpush1.bf16.msra.mxu0 %v1246_v4  ;;  %v1266_v19 = vld [vmem:[#allocation6] sm:$0xff]   ;;  %1190 = vmatprep.subr.bf16.mxu1 %v1265_v16  ;;  %v1268_v23 = vld [vmem:[#allocation6 + $0x8] sm:$0xff]   ;;  %v1269_v25 = vld [vmem:[#allocation6 + $0x50] sm:$0xff]   ;;  %v408_v55 = vunpack.c.0.s8 %v407_v53  ;;  %v1541_v60 = vsub.s32 0, %v96_v56  ;;  %v1546_v62 = vsub.s32 1, %v96_v56 }
  0x2f   :  { %189 = vmatprep.subr.bf16.mxu0 %v1247_v5  ;;  %v1259_v20 = vld [vmem:[#allocation3 + $0x64] ss:$8 sps:$4 sm:$0xff]   ;;  %1191 = vmatpush3.bf16.msra.mxu1 %v1266_v19  ;;  %v1261_v24 = vld [vmem:[#allocation3 + $0x60] ss:$8 sps:$4 sm:$0xff]   ;;  %v1262_v26 = vld [vmem:[#allocation3 + $0x74] ss:$8 sps:$4 sm:$0xff]  }
  0x30   :  { %328 = vperm.xlu0 %1239, %v1161_v14   ;;  %353 = vperm.xlu1 %1240, %v1162_v15   ;;  %v1167_v27 = vld [vmem:[%s1883_s1 + $0x28] sm:$0xff]  ;;  %v1270_v28 = vld [vmem:[#allocation6 + $0x10] sm:$0xff]   ;;  %v1271_v29 = vld [vmem:[#allocation6 + $0x58] sm:$0xff]   ;;  %v411_v59 = vsub.s32 %v408_v55, %v96_v56 }
  0x31   :  { %1192 = vmatprep.subr.bf16.mxu1 %v1267_v21  ;;  %v1264_v30 = vld [vmem:[#allocation3 + $0x70] ss:$8 sps:$4 sm:$0xff]   ;;  %v1487_v31 = vld [vmem:[%s1882_s0] sm:$0xff]  ;;  %v1492_v32 = vld [vmem:[%s1882_s0 + $0x8] sm:$0xff] }
  0x32   :  { %190 = vmatpush1.bf16.msra.mxu0 %v1249_v6  ;;  %v1272_v33 = vld [vmem:[#allocation6 + $0x18] sm:$0xff]   ;;  %v1273_v34 = vld [vmem:[#allocation6 + $0x60] sm:$0xff]   ;;  %v73_v35 = vpack.c.bf16 %v1492_v32, %v1487_v31  ;;  %v1500_v36 = vld [vmem:[%s1882_s0 + $0x10] sm:$0xff] }
  0x33   :  { %191 = vmatprep.subr.bf16.mxu0 %v1250_v7  ;;  %1193 = vmatpush3.bf16.msra.mxu1 %v1268_v23  ;;  %v1505_v37 = vld [vmem:[%s1882_s0 + $0x18] sm:$0xff]  ;;  %v1513_v39 = vld [vmem:[%s1882_s0 + $0x20] sm:$0xff]  ;;  %v1518_v40 = vld [vmem:[%s1882_s0 + $0x28] sm:$0xff] }
  0x34   :  { %612 = vperm.xlu0 %1239, %v1170_v18   ;;  %378 = vperm.xlu1 %1240, %v1163_v22   ;;  %v74_v38 = vpack.c.bf16 %v1505_v37, %v1500_v36  ;;  %v75_v41 = vpack.c.bf16 %v1518_v40, %v1513_v39  ;;  %v1526_v42 = vld [vmem:[%s1882_s0 + $0x30] sm:$0xff]  ;;  %v1531_v43 = vld [vmem:[%s1882_s0 + $0x38] sm:$0xff]  ;;  %v1274_v45 = vld [vmem:[#allocation6 + $0x20] sm:$0xff]  }
  0x35   :  { %1194 = vmatprep.subr.bf16.mxu1 %v1269_v25  ;;  %v76_v44 = vpack.c.bf16 %v1531_v43, %v1526_v42  ;;  %v1275_v46 = vld [vmem:[#allocation6 + $0x68] sm:$0xff]   ;;  %v1277_v48 = vld [vmem:[#allocation6 + $0x70] sm:$0xff]   ;;  %v1279_v50 = vld [vmem:[#allocation6 + $0x78] sm:$0xff]  }
  0x36   :  { %192 = vmatpush1.bf16.msra.mxu0 %v1252_v8  ;;  %v1276_v47 = vld [vmem:[#allocation6 + $0x28] sm:$0xff]   ;;  %v1278_v49 = vld [vmem:[#allocation6 + $0x30] sm:$0xff]   ;;  %v1280_v51 = vld [vmem:[#allocation6 + $0x38] sm:$0xff]  }
  0x37   :  { %193 = vmatprep.subr.bf16.mxu0 %v1253_v9  ;;  %1195 = vmatpush3.bf16.msra.mxu1 %v1270_v28  ;;  %v1164_v57 = vld.sshfl [vmem:[%s1888_s6] sm:$0x55 pattern:$0x75316420] }
  0x38   :  { %525 = vperm.xlu0 %1239, %v1167_v27   ;;  %1196 = vmatprep.subr.bf16.mxu1 %v1271_v29  ;;  %v1165_v58 = vld.sshfl [vmem:[%s1889_s7] sm:$0x55 pattern:$0x75316420]  ;;  %v405_v63 = vcombine.high %v1164_v57, %v1164_v57  ;;  %v412_v3 = vrot.slane %v1164_v57, %v411_v59 }
  0x39   :  { %v93_v61 = vld [vmem:[%s1885_s3] sm:$0x3]  ;;  %v436_v6 = vrot.slane %v1165_v58, %v411_v59 }
  0x3a   :  { %194 = vmatpush1.bf16.msra.mxu0 %v1255_v11  ;;  %v274_v1 = vld [vmem:[%s1888_s6] ss:$4 sm:$0x3]  ;;  %v1558_v5 = vrot.slane %v93_v61, %v1541_v60  ;;  %v1564_v8 = vrot.slane %v93_v61, %v1546_v62  ;;  %v419_v9 = vrot.slane %v405_v63, %v411_v59  ;;  %v1590_v23 = vrot.slane %v412_v3, %v1546_v62 }
  0x3b   :  { %195 = vmatprep.subr.bf16.mxu0 %v1256_v12  ;;  %1197 = vmatpush3.bf16.msra.mxu1 %v1272_v33  ;;  %v275_v2 = vld [vmem:[%s1889_s7] ss:$4 sm:$0x3]  ;;  %v1567_v11 = vrot.slane %v274_v1, %v1541_v60  ;;  %v1573_v13 = vrot.slane %v274_v1, %v1546_v62  ;;  %v1587_v22 = vrot.slane %v436_v6, %v1541_v60 }
  0x3c   :  { %1198 = vmatprep.subr.bf16.mxu1 %v1273_v34  ;;  %v1168_v4 = vld.sshfl [vmem:[%s1888_s6] sm:$0xff pattern:$0x75316420]  ;;  %v1570_v12 = vrot.slane %v275_v2, %v1546_v62  ;;  %v1576_v16 = vrot.slane %v275_v2, %v1541_v60  ;;  %v1598_v28 = vrot.slane %v436_v6, %v1546_v62  ;;  %v1601_v29 = vrot.slane %v419_v9, %v1541_v60 }
  0x3d   :  { %v1169_v7 = vld.sshfl [vmem:[%s1889_s7] sm:$0xff pattern:$0x75316420]  ;;  %v563_v14 = vcombine.high %v1168_v4, %v1168_v4  ;;  %v1581_v18 = vrot.slane %v1168_v4, %v411_v59 }
  0x3e   :  { %196 = vmatpush1.bf16.msra.mxu0 %v1258_v17  ;;  %v1579_v17 = vrot.slane %v412_v3, %v1541_v60  ;;  %v589_v19 = vcombine.high %v1169_v7, %v1169_v7 }
  0x3f   :  { %197 = vmatprep.subr.bf16.mxu0 %v1259_v20  ;;  %1199 = vmatpush3.bf16.msra.mxu1 %v1274_v45 }
  0x40   :  { %1200 = vmatprep.subr.bf16.mxu1 %v1275_v46  ;;  %v1618_v46 = vrot.slane %v589_v19, %v411_v59 }
  0x42   :  { %198 = vmatpush1.bf16.msra.mxu0 %v1261_v24  ;;  %v1592_v24 = vrot.slane %v1169_v7, %v411_v59 }
  0x43   :  { %199 = vmatprep.subr.bf16.mxu0 %v1262_v26  ;;  %1201 = vmatpush3.bf16.msra.mxu1 %v1276_v47  ;;  %v1622_v47 = vcombine.high %v1581_v18, %v1581_v18 }
  0x44   :  { %1202 = vmatprep.subr.bf16.mxu1 %v1277_v48 }
  0x46   :  { %200 = vmatpush1.bf16.msra.mxu0 %v1264_v30 }
  0x47   :  { %1203 = vmatpush3.bf16.msra.mxu1 %v1278_v49 }
  0x48   :  { %1204 = vmatprep.subr.bf16.mxu1 %v1279_v50 }
  0x49   :  { %218 = vmatmul.mubr.bf16.vlgmr.msra.gmra.mrb[0].mxu0 %v73_v35  ;;  %v1608_v35 = vrot.slane %v419_v9, %v1546_v62 }
  0x4a   :  { %227 = vmatprep.mubr.bf16.mxu0 %v1375_v0 }
  0x4b   :  { %1205 = vmatpush3.bf16.msra.mxu1 %v1280_v51  ;;  %v1630_v51 = vcombine.high %v1592_v24, %v1592_v24 }
  0x51   :  { %228 = vmatmul.mubr.bf16.gmra.mrb[4].mxu0 %v74_v38 }
  0x52   :  { %237 = vmatprep.mubr.bf16.mxu0 %v1375_v0 }
  0x59   :  { %238 = vmatmul.mubr.bf16.gmra.mrb[8].mxu0 %v75_v41  ;;  %v1613_v41 = vrot.slane %v563_v14, %v411_v59 }
  0x5a   :  { %247 = vmatprep.mubr.bf16.mxu0 %v1375_v0  ;;  %v429_v0 = vcombine.high %v1165_v58, %v1165_v58 }
  0x5b   :  { %v1655_v9 = vcombine.high %v1613_v41, %v1613_v41 }
  0x5c   :  { %v443_v10 = vrot.slane %v429_v0, %v411_v59 }
  0x5e   :  { %v1604_v30 = vrot.slane %v443_v10, %v1541_v60  ;;  %v1611_v38 = vrot.slane %v443_v10, %v1546_v62 }
  0x61   :  { %248 = vmatmul.mubr.bf16.gmra.mrb[12].mxu0 %v76_v44 }
  0xab   :  { %v282_v25 = vpop.permute.xlu0 %281 }
  0xaf   :  { %v329_v10 = vpop.permute.xlu0 %328 }
 0x11c   :  { %v219_v15 = vpop.f32.mrb[0].mxu0 }
 0x11d   :  { %v1584_v20 = vadd.f32 %v219_v15, %v1558_v5  ;;  %v221_v21 = vpop.f32.mrb[1].mxu0 }
 0x11e   :  { %v1595_v26 = vadd.f32 %v221_v21, %v1564_v8  ;;  %v223_v27 = vpop.f32.mrb[2].mxu0 }
 0x11f   :  { %v284_v33 = vmul.f32 %v282_v25, %v1584_v20  ;;  %v225_v34 = vpop.f32.mrb[3].mxu0  ;;  %v224_v61 = vadd.f32 %v223_v27, %v1558_v5  ;;  %v451_v27 = vpop.permute.xlu1 %450 }
 0x120   :  { %v285_v44 = vmul.f32 %v282_v25, %v1595_v26  ;;  %v226_v0 = vadd.f32 %v225_v34, %v1564_v8  ;;  %v1660_v25 = vcombine.high %v1618_v46, %v1618_v46 }
 0x121   :  { %v297_v48 = vmul.f32 %v1567_v11, %v284_v33  ;;  %v311_v49 = vmul.f32 %v1570_v12, %v284_v33 }
 0x122   :  { %v298_v52 = vmul.f32 %v1573_v13, %v285_v44  ;;  %v310_v53 = vmul.f32 %v1576_v16, %v285_v44 }
 0x123   :  { %v354_v55 = vpop.permute.xlu1 %353 }
 0x124   :  { %v312_v63 = vadd.f32 %v310_v53, %v297_v48  ;;  %v313_v1 = vadd.f32 %v311_v49, %v298_v52  ;;  %v229_v2 = vpop.f32.mrb[4].mxu0 }
 0x125   :  { %v230_v3 = vadd.f32 %v229_v2, %v1558_v5  ;;  %v231_v4 = vpop.f32.mrb[5].mxu0 }
 0x126   :  { %v317_v14 = vadd.f32 %v312_v63, %v224_v61  ;;  %v318_v15 = vadd.f32 %v313_v1, %v226_v0  ;;  %v232_v19 = vadd.f32 %v231_v4, %v1564_v8  ;;  %v233_v21 = vpop.f32.mrb[6].mxu0 }
 0x127   :  { %v331_v33 = vmul.f32 %v329_v10, %v230_v3  ;;  %v234_v34 = vadd.f32 %v233_v21, %v1558_v5  ;;  %v235_v44 = vpop.f32.mrb[7].mxu0 }
 0x128   :  { %v453_v52 = vmul.f32 %v451_v27, %v317_v14  ;;  %v454_v53 = vmul.f32 %v451_v27, %v318_v15  ;;  %v332_v61 = vmul.f32 %v329_v10, %v232_v19  ;;  %v236_v63 = vadd.f32 %v235_v44, %v1564_v8 }
 0x129   :  { %v333_v0 = vmul.f32 %v331_v33, %v1567_v11  ;;  %v336_v1 = vmul.f32 %v331_v33, %v1570_v12  ;;  %v762_v2 = vpack.c.bf16 %v318_v15, %v1595_v26  ;;  %v761_v4 = vpack.c.bf16 %v317_v14, %v1584_v20 }
 0x12a   :  { %v475_v21 = vmul.f32 %v1579_v17, %v453_v52  ;;  %v499_v48 = vmul.f32 %v1587_v22, %v454_v53  ;;  %v334_v7 = vmul.f32 %v332_v61, %v1573_v13  ;;  %v335_v49 = vmul.f32 %v332_v61, %v1576_v16 }
 0x12b   :  { %v476_v10 = vmul.f32 %v1590_v23, %v454_v53  ;;  %v500_v27 = vmul.f32 %v1598_v28, %v453_v52  ;;  %v477_v44 = vmul.f32 %v1601_v29, %v453_v52  ;;  %v501_v33 = vmul.f32 %v1604_v30, %v454_v53  ;;  %936 = vmatprep.mubr.bf16.mxu1 %v762_v2 }
 0x12c   :  { %v503_v26 = vadd.f32 %v499_v48, %v475_v21  ;;  %v337_v15 = vadd.f32 %v335_v49, %v333_v0  ;;  %v338_v20 = vadd.f32 %v336_v1, %v334_v7  ;;  %v478_v14 = vmul.f32 %v1608_v35, %v454_v53  ;;  %937 = vmatmul.mubr.bf16.vlgmr.msra.gmra.mrb[0].mxu1 %v761_v4  ;;  %v239_v6 = vpop.f32.mrb[8].mxu0 }
 0x12d   :  { %v504_v59 = vadd.f32 %v500_v27, %v476_v10  ;;  %v505_v58 = vadd.f32 %v501_v33, %v477_v44  ;;  %v502_v61 = vmul.f32 %v1611_v38, %v453_v52  ;;  %v240_v57 = vadd.f32 %v239_v6, %v1558_v5  ;;  %v241_v54 = vpop.f32.mrb[9].mxu0 }
 0x12e   :  { %v511_v50 = vadd.f32 %v503_v26, %v230_v3  ;;  %v342_v56 = vadd.f32 %v337_v15, %v234_v34  ;;  %v343_v45 = vadd.f32 %v338_v20, %v236_v63  ;;  %v242_v2 = vadd.f32 %v241_v54, %v1564_v8  ;;  %v243_v48 = vpop.f32.mrb[10].mxu0  ;;  %v613_v34 = vpop.permute.xlu0 %612 }
 0x12f   :  { %v512_v49 = vadd.f32 %v504_v59, %v232_v19  ;;  %v506_v7 = vadd.f32 %v502_v61, %v478_v14  ;;  %v356_v0 = vmul.f32 %v354_v55, %v240_v57  ;;  %v245_v53 = vpop.f32.mrb[11].mxu0  ;;  %v244_v27 = vadd.f32 %v243_v48, %v1558_v5 }
 0x130   :  { %v513_v4 = vadd.f32 %v505_v58, %v342_v56  ;;  %v357_v21 = vmul.f32 %v354_v55, %v242_v2  ;;  %v1893_v33 = vrot.slane %v1581_v18, %v1541_v60  ;;  %v1894_v15 = vrot.slane %v1592_v24, %v1546_v62 }
 0x131   :  { %v514_v52 = vadd.f32 %v506_v7, %v343_v45  ;;  %v358_v54 = vmul.f32 %v356_v0, %v1567_v11  ;;  %v361_v59 = vmul.f32 %v356_v0, %v1570_v12  ;;  %v246_v45 = vadd.f32 %v245_v53, %v1564_v8 }
 0x132   :  { %v1694_v63 = vmul.f32 %v613_v34, %v513_v4  ;;  %v359_v56 = vmul.f32 %v357_v21, %v1573_v13  ;;  %v360_v55 = vmul.f32 %v357_v21, %v1576_v16  ;;  %v763_v58 = vpack.c.bf16 %v513_v4, %v511_v50 }
 0x133   :  { %v1698_v10 = vmul.f32 %v613_v34, %v514_v52  ;;  %v764_v44 = vpack.c.bf16 %v514_v52, %v512_v49  ;;  %v1895_v50 = vrot.slane %v1613_v41, %v1541_v60  ;;  %v1896_v49 = vrot.slane %v1592_v24, %v1541_v60 }
 0x134   :  { %v657_v26 = vmul.f32 %v1893_v33, %v1694_v63  ;;  %v706_v20 = vmul.f32 %v1894_v15, %v1694_v63  ;;  %v362_v14 = vadd.f32 %v360_v55, %v358_v54  ;;  %v249_v48 = vpop.f32.mrb[12].mxu0  ;;  %v1897_v0 = vrot.slane %v1581_v18, %v1546_v62  ;;  %v379_v54 = vpop.permute.xlu1 %378 }
 0x135   :  { %v659_v61 = vmul.f32 %v1895_v50, %v1694_v63  ;;  %v705_v7 = vmul.f32 %v1896_v49, %v1698_v10  ;;  %v1898_v4 = vrot.slane %v1618_v46, %v1541_v60  ;;  %v363_v34 = vadd.f32 %v361_v59, %v359_v56  ;;  %944 = vmatprep.mubr.bf16.mxu1 %v764_v44  ;;  %v251_v52 = vpop.f32.mrb[13].mxu0 }
 0x136   :  { %v658_v53 = vmul.f32 %v1897_v0, %v1698_v10  ;;  %v367_v55 = vadd.f32 %v362_v14, %v244_v27  ;;  %v1899_v24 = vrot.slane %v1613_v41, %v1546_v62  ;;  %v1900_v18 = vrot.slane %v1618_v46, %v1546_v62  ;;  %945 = vmatmul.mubr.bf16.gmra.mrb[4].mxu1 %v763_v58  ;;  %v253_v49 = vpop.f32.mrb[14].mxu0  ;;  %v526_v0 = vpop.permute.xlu0 %525 }
 0x137   :  { %v707_v21 = vmul.f32 %v1898_v4, %v1698_v10  ;;  %v250_v50 = vadd.f32 %v249_v48, %v1558_v5  ;;  %v713_v59 = vadd.f32 %v705_v7, %v657_v26  ;;  %v368_v4 = vadd.f32 %v363_v34, %v246_v45  ;;  %v255_v27 = vpop.f32.mrb[15].mxu0 }
 0x138   :  { %v660_v33 = vmul.f32 %v1899_v24, %v1698_v10  ;;  %v708_v15 = vmul.f32 %v1900_v18, %v1694_v63  ;;  %v714_v56 = vadd.f32 %v706_v20, %v658_v53  ;;  %v528_v14 = vmul.f32 %v526_v0, %v367_v55 }
 0x139   :  { %v715_v44 = vadd.f32 %v707_v21, %v659_v61  ;;  %v381_v3 = vmul.f32 %v379_v54, %v250_v50  ;;  %v1901_v41 = vrot.slane %v1622_v47, %v1541_v60  ;;  %v729_v46 = vadd.f32 %v713_v59, %v240_v57 }
 0x13a   :  { %v716_v19 = vadd.f32 %v708_v15, %v660_v33  ;;  %v730_v18 = vadd.f32 %v714_v56, %v242_v2  ;;  %v529_v48 = vmul.f32 %v526_v0, %v368_v4  ;;  %v530_v45 = vmul.f32 %v528_v14, %v1579_v17 }
 0x13b   :  { %v661_v24 = vmul.f32 %v1901_v41, %v1694_v63  ;;  %v731_v6 = vadd.f32 %v715_v44, %v367_v55  ;;  %v383_v1 = vmul.f32 %v381_v3, %v1567_v11  ;;  %v386_v26 = vmul.f32 %v381_v3, %v1570_v12 }
 0x13c   :  { %v732_v58 = vadd.f32 %v716_v19, %v368_v4  ;;  %v534_v20 = vmul.f32 %v529_v48, %v1587_v22  ;;  %v1902_v61 = vrot.slane %v1630_v51, %v1541_v60  ;;  %v252_v53 = vadd.f32 %v251_v52, %v1564_v8 }
 0x13d   :  { %v531_v57 = vmul.f32 %v529_v48, %v1590_v23  ;;  %v535_v2 = vmul.f32 %v528_v14, %v1598_v28  ;;  %v1903_v11 = vrot.slane %v1622_v47, %v1546_v62  ;;  %v1904_v17 = vrot.slane %v1630_v51, %v1546_v62 }
 0x13e   :  { %v709_v7 = vmul.f32 %v1902_v61, %v1698_v10  ;;  %v254_v3 = vadd.f32 %v253_v49, %v1558_v5  ;;  %v538_v19 = vadd.f32 %v534_v20, %v530_v45  ;;  %v382_v34 = vmul.f32 %v379_v54, %v252_v53 }
 0x13f   :  { %v662_v12 = vmul.f32 %v1903_v11, %v1698_v10  ;;  %v710_v22 = vmul.f32 %v1904_v17, %v1694_v63  ;;  %v532_v52 = vmul.f32 %v528_v14, %v1601_v29  ;;  %v539_v23 = vadd.f32 %v535_v2, %v531_v57 }
 0x140   :  { %v717_v21 = vadd.f32 %v709_v7, %v661_v24  ;;  %v536_v28 = vmul.f32 %v529_v48, %v1604_v30  ;;  %v256_v33 = vadd.f32 %v255_v27, %v1564_v8  ;;  %v546_v47 = vadd.f32 %v538_v19, %v250_v50 }
 0x141   :  { %v718_v55 = vadd.f32 %v710_v22, %v662_v12  ;;  %v384_v15 = vmul.f32 %v382_v34, %v1573_v13  ;;  %v385_v0 = vmul.f32 %v382_v34, %v1576_v16  ;;  %v533_v51 = vmul.f32 %v529_v48, %v1608_v35 }
 0x142   :  { %v547_v59 = vadd.f32 %v539_v23, %v252_v53  ;;  %v540_v5 = vadd.f32 %v536_v28, %v532_v52  ;;  %v537_v49 = vmul.f32 %v528_v14, %v1611_v38  ;;  %v766_v54 = vpack.c.bf16 %v732_v58, %v730_v18 }
 0x143   :  { %v733_v56 = vadd.f32 %v717_v21, %v546_v47  ;;  %v387_v29 = vadd.f32 %v385_v0, %v383_v1  ;;  %v388_v44 = vadd.f32 %v386_v26, %v384_v15  ;;  %v765_v4 = vpack.c.bf16 %v731_v6, %v729_v46 }
 0x144   :  { %v734_v41 = vadd.f32 %v718_v55, %v547_v59  ;;  %v541_v30 = vadd.f32 %v537_v49, %v533_v51  ;;  %952 = vmatprep.mubr.bf16.mxu1 %v766_v54  ;;  %v1905_v8 = vrot.slane %v1655_v9, %v1546_v62  ;;  %v1906_v16 = vrot.slane %v1660_v25, %v1546_v62 }
 0x145   :  { %v392_v50 = vadd.f32 %v387_v29, %v254_v3  ;;  %v393_v38 = vadd.f32 %v388_v44, %v256_v33  ;;  %953 = vmatmul.mubr.bf16.gmra.mrb[8].mxu1 %v765_v4  ;;  %v1907_v1 = vrot.slane %v1655_v9, %v1541_v60  ;;  %v1908_v27 = vrot.slane %v1660_v25, %v1541_v60  ;;  %v1171_v9 = vld [vmem:[%s1887_s5] ss:$0 sm:$0xff] }
 0x146   :  { %v664_v13 = vmul.f32 %v1905_v8, %v1698_v10  ;;  %v712_v35 = vmul.f32 %v1906_v16, %v1694_v63 }
 0x147   :  { %v663_v6 = vmul.f32 %v1907_v1, %v1694_v63  ;;  %v711_v14 = vmul.f32 %v1908_v27, %v1698_v10  ;;  %v548_v46 = vadd.f32 %v540_v5, %v392_v50  ;;  %v549_v18 = vadd.f32 %v541_v30, %v393_v38 }
 0x148   :  { %v720_v24 = vadd.f32 %v712_v35, %v664_v13 }
 0x149   :  { %v719_v48 = vadd.f32 %v711_v14, %v663_v6 }
 0x14a   :  { %v736_v58 = vadd.f32 %v720_v24, %v549_v18 }
 0x14b   :  { %v735_v62 = vadd.f32 %v719_v48, %v548_v46 }
 0x14c   :  { %v768_v26 = vpack.c.bf16 %v736_v58, %v734_v41 }
 0x14d   :  { %v767_v45 = vpack.c.bf16 %v735_v62, %v733_v56 }
 0x14e   :  { %960 = vmatprep.mubr.bf16.mxu1 %v768_v26 }
 0x14f   :  { %961 = vmatmul.mubr.bf16.gmra.mrb[12].mxu1 %v767_v45 }
 0x1ff   :  { %v1206_v20 = vpop.f32.mrb[0].mxu1 }
 0x200   :  { %v1207_v63 = vpop.f32.mrb[1].mxu1 }
 0x201   :  { %v1208_v61 = vadd.f32 %v1207_v63, %v1206_v20  ;;  %v1209_v7 = vpop.f32.mrb[2].mxu1 }
 0x202   :  { %v1210_v60 = vpop.f32.mrb[3].mxu1 }
 0x203   :  { %v939_v25 = vadd.f32 %v1208_v61, %v1171_v9  ;;  %v1211_v10 = vadd.f32 %v1210_v60, %v1209_v7 }
 0x205   :  { %v942_v53 = vadd.f32 %v1211_v10, %v1171_v9  ;;  %v1786_v57 = vadd.f32 %v939_v25, %v1487_v31 }
 0x207   :  { %977 = vadd.xlane.f32.xlu1 %v1786_v57  ;;  %v1790_v2 = vadd.f32 %v942_v53, %v1492_v32  ;;  %v993_v19 = vmul.f32 %v1786_v57, %v1786_v57 }
 0x209   :  { %979 = vadd.xlane.f32.xlu0 %v1790_v2  ;;  %v1212_v11 = vpop.f32.mrb[4].mxu1  ;;  %v994_v12 = vmul.f32 %v1790_v2, %v1790_v2 }
 0x20a   :  { %v1213_v17 = vpop.f32.mrb[5].mxu1 }
 0x20b   :  { %v1214_v22 = vadd.f32 %v1213_v17, %v1212_v11  ;;  %1003 = vadd.xlane.f32.xlu1 %v994_v12  ;;  %v1215_v3 = vpop.f32.mrb[6].mxu1 }
 0x20c   :  { %v1216_v31 = vpop.f32.mrb[7].mxu1 }
 0x20d   :  { %v947_v21 = vadd.f32 %v1214_v22, %v1171_v9  ;;  %v1217_v34 = vadd.f32 %v1216_v31, %v1215_v3  ;;  %1001 = vadd.xlane.f32.xlu0 %v993_v19 }
 0x20f   :  { %v950_v52 = vadd.f32 %v1217_v34, %v1171_v9  ;;  %v1798_v32 = vadd.f32 %v947_v21, %v1500_v36 }
 0x211   :  { %981 = vadd.xlane.f32.xlu0 %v1798_v32  ;;  %v1802_v23 = vadd.f32 %v950_v52, %v1505_v37  ;;  %v995_v55 = vmul.f32 %v1798_v32, %v1798_v32  ;;  %v1837_v52 = vld [vmem:[%s1890_s8] ss:$0 sm:$0xff]  ;;  %s1377_s8 = smov [#allocation8]  }
 0x213   :  { %983 = vadd.xlane.f32.xlu1 %v1802_v23  ;;  %v996_v28 = vmul.f32 %v1802_v23, %v1802_v23 }
 0x215   :  { %1005 = vadd.xlane.f32.xlu0 %v995_v55 }
 0x217   :  { %1007 = vadd.xlane.f32.xlu1 %v996_v28 }
 0x218   :  { %v1218_v33 = vpop.f32.mrb[8].mxu1 }
 0x219   :  { %v1219_v47 = vpop.f32.mrb[9].mxu1 }
 0x21a   :  { %v1220_v15 = vadd.f32 %v1219_v47, %v1218_v33  ;;  %v1221_v36 = vpop.f32.mrb[10].mxu1 }
 0x21b   :  { %v1222_v0 = vpop.f32.mrb[11].mxu1 }
 0x21c   :  { %v955_v51 = vadd.f32 %v1220_v15, %v1171_v9  ;;  %v1223_v59 = vadd.f32 %v1222_v0, %v1221_v36  ;;  %v1843_v0 = vld [vmem:[%s1891_s9] ss:$0 sm:$0xff]  ;;  %s1132_s9 = sshll.u32 %s1377_s8, 4  ;;  %s1133_s9 = int_to_ptr.vmem [resolvable:$true] %s1132_s9 }
 0x21d   :  { %s1341_s22 = scalar_lea.vmem %s1133_s9, 1024  ;;  %p1346_p3 = scmp.lt.s32.totalorder %s1133_s9, %s1133_s9 }
 0x21e   :  { %v958_v5 = vadd.f32 %v1223_v59, %v1171_v9  ;;  %v1810_v37 = vadd.f32 %v955_v51, %v1513_v39  ;;  %p1342_p2 = scmp.ne.s32.totalorder %s1133_s9, %s1341_s22  ;;  %p1347_p4 = scmp.lt.s32.totalorder %s1341_s22, %s1341_s22 }
 0x220   :  { %985 = vadd.xlane.f32.xlu0 %v1810_v37  ;;  %v1814_v49 = vadd.f32 %v958_v5, %v1518_v40  ;;  %v997_v29 = vmul.f32 %v1810_v37, %v1810_v37  ;;  %p1348_p5 = por %p1347_p4, %p1346_p3 }
 0x222   :  { %v1224_v54 = vpop.f32.mrb[12].mxu1  ;;  %987 = vadd.xlane.f32.xlu1 %v1814_v49  ;;  %v998_v39 = vmul.f32 %v1814_v49, %v1814_v49  ;;  %p1349_p6 = pnand %p1348_p5, %p1342_p2 }
 0x223   :  { %v1225_v56 = vpop.f32.mrb[13].mxu1 }
 0x224   :  { %v1226_v44 = vadd.f32 %v1225_v56, %v1224_v54  ;;  %v1227_v4 = vpop.f32.mrb[14].mxu1  ;;  %1009 = vadd.xlane.f32.xlu0 %v997_v29 }
 0x225   :  { %v1228_v41 = vpop.f32.mrb[15].mxu1 }
 0x226   :  { %v963_v30 = vadd.f32 %v1226_v44, %v1171_v9  ;;  %v1229_v8 = vadd.f32 %v1228_v41, %v1227_v4  ;;  %1011 = vadd.xlane.f32.xlu1 %v998_v39 }
 0x228   :  { %v966_v13 = vadd.f32 %v1229_v8, %v1171_v9  ;;  %v1822_v40 = vadd.f32 %v963_v30, %v1526_v42 }
 0x22a   :  { %989 = vadd.xlane.f32.xlu0 %v1822_v40  ;;  %v1826_v16 = vadd.f32 %v966_v13, %v1531_v43  ;;  %v999_v35 = vmul.f32 %v1822_v40, %v1822_v40 }
 0x22c   :  { %991 = vadd.xlane.f32.xlu1 %v1826_v16  ;;  %v1000_v50 = vmul.f32 %v1826_v16, %v1826_v16 }
 0x22e   :  { %1013 = vadd.xlane.f32.xlu0 %v999_v35 }
 0x230   :  { %1015 = vadd.xlane.f32.xlu1 %v1000_v50 }
 0x294   :  { %v978_v38 = vpop.xlane.xlu1 %977 }
 0x295   :  { %v1017_v6 = vmul.f32 0.0625, %v978_v38 }
 0x296   :  { %v980_v1 = vpop.xlane.xlu0 %979 }
 0x297   :  { %v1018_v42 = vmul.f32 0.0625, %v980_v1  ;;  %v1033_v43 = vmul.f32 %v1017_v6, %v1017_v6  ;;  %v1057_v33 = vsub.f32 %v1786_v57, %v1017_v6 }
 0x298   :  { %v1004_v27 = vpop.xlane.xlu1 %1003 }
 0x299   :  { %v1034_v14 = vmul.f32 %v1018_v42, %v1018_v42  ;;  %v1026_v24 = vmul.f32 0.0625, %v1004_v27  ;;  %v1058_v21 = vsub.f32 %v1790_v2, %v1018_v42 }
 0x29a   :  { %v1002_v46 = vpop.xlane.xlu0 %1001 }
 0x29b   :  { %v1042_v18 = vsub.f32 %v1026_v24, %v1034_v14  ;;  %v1025_v48 = vmul.f32 0.0625, %v1002_v46 }
 0x29d   :  { %v1050_v58 = vmax.f32 %v1042_v18, 0.0  ;;  %v1041_v62 = vsub.f32 %v1025_v48, %v1033_v43 }
 0x29e   :  { %v982_v26 = vpop.xlane.xlu0 %981 }
 0x29f   :  { %v1066_v45 = vadd.f32 1e-05, %v1050_v58  ;;  %v1049_v20 = vmax.f32 %v1041_v62, 0.0  ;;  %v1019_v9 = vmul.f32 0.0625, %v982_v26 }
 0x2a0   :  { %v984_v63 = vpop.xlane.xlu1 %983 }
 0x2a1   :  { %1281 = vrsqrt.f32 %v1066_v45  ;;  %v1065_v61 = vadd.f32 1e-05, %v1049_v20  ;;  %v1020_v7 = vmul.f32 0.0625, %v984_v63  ;;  %v1035_v25 = vmul.f32 %v1019_v9, %v1019_v9 }
 0x2a2   :  { %v1006_v60 = vpop.xlane.xlu0 %1005  ;;  %v1059_v13 = vsub.f32 %v1798_v32, %v1019_v9 }
 0x2a3   :  { %1283 = vrsqrt.f32 %v1065_v61  ;;  %v1027_v10 = vmul.f32 0.0625, %v1006_v60  ;;  %v1036_v11 = vmul.f32 %v1020_v7, %v1020_v7  ;;  %v1060_v42 = vsub.f32 %v1802_v23, %v1020_v7 }
 0x2a4   :  { %v1008_v53 = vpop.xlane.xlu1 %1007 }
 0x2a5   :  { %v1043_v12 = vsub.f32 %v1027_v10, %v1035_v25  ;;  %v1028_v17 = vmul.f32 0.0625, %v1008_v53 }
 0x2a7   :  { %v1051_v22 = vmax.f32 %v1043_v12, 0.0  ;;  %v1044_v3 = vsub.f32 %v1028_v17, %v1036_v11 }
 0x2a9   :  { %v1067_v19 = vadd.f32 1e-05, %v1051_v22  ;;  %v1052_v31 = vmax.f32 %v1044_v3, 0.0 }
 0x2ab   :  { %v1282_v34 = vpop.eup %1281  ;;  %1285 = vrsqrt.f32 %v1067_v19  ;;  %v1068_v55 = vadd.f32 1e-05, %v1052_v31 }
 0x2ac   :  { %v1082_v47 = vmul.f32 %v1282_v34, %v1058_v21 }
 0x2ad   :  { %v986_v28 = vpop.xlane.xlu0 %985  ;;  %v1284_v36 = vpop.eup %1283  ;;  %1287 = vrsqrt.f32 %v1068_v55 }
 0x2ae   :  { %v1021_v15 = vmul.f32 0.0625, %v986_v28  ;;  %v1097_v51 = vmul.f32 %v1837_v52, %v1082_v47  ;;  %v1081_v59 = vmul.f32 %v1284_v36, %v1057_v33 }
 0x2af   :  { %v988_v2 = vpop.xlane.xlu1 %987 }
 0x2b0   :  { %v1022_v5 = vmul.f32 0.0625, %v988_v2  ;;  %v1112_v56 = vadd.f32 %v1843_v0, %v1097_v51  ;;  %v1096_v29 = vmul.f32 %v1837_v52, %v1081_v59  ;;  %v1037_v57 = vmul.f32 %v1021_v15, %v1021_v15 }
 0x2b1   :  { %v1010_v54 = vpop.xlane.xlu0 %1009  ;;  %v1061_v12 = vsub.f32 %v1810_v37, %v1021_v15 }
 0x2b2   :  { %v1029_v44 = vmul.f32 0.0625, %v1010_v54  ;;  %1120 = vst [vmem:[#allocation8 + $0x8] sm:$0xff] %v1112_v56  ;;  %v1111_v41 = vadd.f32 %v1843_v0, %v1096_v29  ;;  %v1038_v39 = vmul.f32 %v1022_v5, %v1022_v5  ;;  %v1062_v3 = vsub.f32 %v1814_v49, %v1022_v5 }
 0x2b3   :  { %v1012_v4 = vpop.xlane.xlu1 %1011 }
 0x2b4   :  { %v1045_v30 = vsub.f32 %v1029_v44, %v1037_v57  ;;  %v1030_v8 = vmul.f32 0.0625, %v1012_v4  ;;  %1119 = vst [vmem:[#allocation8] sm:$0xff] %v1111_v41 }
 0x2b5   :  { %v1286_v1 = vpop.eup %1285 }
 0x2b6   :  { %v1053_v35 = vmax.f32 %v1045_v30, 0.0  ;;  %v1046_v50 = vsub.f32 %v1030_v8, %v1038_v39  ;;  %v1083_v27 = vmul.f32 %v1286_v1, %v1059_v13 }
 0x2b7   :  { %v990_v38 = vpop.xlane.xlu0 %989  ;;  %v1288_v43 = vpop.eup %1287 }
 0x2b8   :  { %v1023_v6 = vmul.f32 0.0625, %v990_v38  ;;  %v1069_v14 = vadd.f32 1e-05, %v1053_v35  ;;  %v1054_v24 = vmax.f32 %v1046_v50, 0.0  ;;  %v1098_v48 = vmul.f32 %v1837_v52, %v1083_v27 }
 0x2b9   :  { %v992_v46 = vpop.xlane.xlu1 %991  ;;  %v1084_v58 = vmul.f32 %v1288_v43, %v1060_v42 }
 0x2ba   :  { %v1024_v18 = vmul.f32 0.0625, %v992_v46  ;;  %1289 = vrsqrt.f32 %v1069_v14  ;;  %v1070_v62 = vadd.f32 1e-05, %v1054_v24  ;;  %v1039_v32 = vmul.f32 %v1023_v6, %v1023_v6 }
 0x2bb   :  { %v1014_v26 = vpop.xlane.xlu0 %1013  ;;  %v1113_v20 = vadd.f32 %v1843_v0, %v1098_v48  ;;  %v1099_v9 = vmul.f32 %v1837_v52, %v1084_v58  ;;  %v1063_v37 = vsub.f32 %v1822_v40, %v1023_v6 }
 0x2bc   :  { %v1031_v45 = vmul.f32 0.0625, %v1014_v26  ;;  %1291 = vrsqrt.f32 %v1070_v62  ;;  %v1040_v63 = vmul.f32 %v1024_v18, %v1024_v18  ;;  %v1064_v15 = vsub.f32 %v1826_v16, %v1024_v18 }
 0x2bd   :  { %v1016_v23 = vpop.xlane.xlu1 %1015  ;;  %1121 = vst [vmem:[#allocation8 + $0x10] sm:$0xff] %v1113_v20  ;;  %v1114_v60 = vadd.f32 %v1843_v0, %v1099_v9 }
 0x2be   :  { %v1047_v61 = vsub.f32 %v1031_v45, %v1039_v32  ;;  %v1032_v7 = vmul.f32 0.0625, %v1016_v23 }
 0x2bf   :  { %1122 = vst [vmem:[#allocation8 + $0x18] sm:$0xff] %v1114_v60 }
 0x2c0   :  { %v1055_v25 = vmax.f32 %v1047_v61, 0.0  ;;  %v1048_v10 = vsub.f32 %v1032_v7, %v1040_v63 }
 0x2c2   :  { %v1071_v53 = vadd.f32 1e-05, %v1055_v25  ;;  %v1056_v11 = vmax.f32 %v1048_v10, 0.0 }
 0x2c4   :  { %1293 = vrsqrt.f32 %v1071_v53  ;;  %v1072_v17 = vadd.f32 1e-05, %v1056_v11  ;;  %v1290_v22 = vpop.eup %1289 }
 0x2c5   :  { %v1085_v19 = vmul.f32 %v1290_v22, %v1061_v12 }
 0x2c6   :  { %1295 = vrsqrt.f32 %v1072_v17  ;;  %v1292_v31 = vpop.eup %1291 }
 0x2c7   :  { %v1100_v21 = vmul.f32 %v1837_v52, %v1085_v19  ;;  %v1086_v34 = vmul.f32 %v1292_v31, %v1062_v3 }
 0x2c9   :  { %v1115_v55 = vadd.f32 %v1843_v0, %v1100_v21  ;;  %v1101_v28 = vmul.f32 %v1837_v52, %v1086_v34 }
 0x2cb   :  { %1123 = vst [vmem:[#allocation8 + $0x20] sm:$0xff] %v1115_v55  ;;  %v1116_v33 = vadd.f32 %v1843_v0, %v1101_v28 }
 0x2cd   :  { %1124 = vst [vmem:[#allocation8 + $0x28] sm:$0xff] %v1116_v33 }
 0x2ce   :  { %v1294_v47 = vpop.eup %1293 }
 0x2cf   :  { %v1087_v49 = vmul.f32 %v1294_v47, %v1063_v37 }
 0x2d0   :  { %v1296_v36 = vpop.eup %1295 }
 0x2d1   :  { %v1102_v2 = vmul.f32 %v1837_v52, %v1087_v49  ;;  %v1088_v51 = vmul.f32 %v1296_v36, %v1064_v15 }
 0x2d3   :  { %v1117_v59 = vadd.f32 %v1843_v0, %v1102_v2  ;;  %v1103_v5 = vmul.f32 %v1837_v52, %v1088_v51 }
 0x2d5   :  { %1125 = vst [vmem:[#allocation8 + $0x30] sm:$0xff] %v1117_v59  ;;  %v1118_v54 = vadd.f32 %v1843_v0, %v1103_v5 }
 0x2d7   :  { %1126 = vst [vmem:[#allocation8 + $0x38] sm:$0xff] %v1118_v54 }
 0x2d8   :  { %1352 = shalt.err (!%p1349_p6)
}
 0x2d9   :  { %s1353_s27 = scalar_lea.hbm %s1892_s10, 1024 }
 0x2da   :  { %p1354_p7 = scmp.ne.s32.totalorder %s1892_s10, %s1353_s27  ;;  %p1357_p8 = scmp.lt.u32.totalorder %s1353_s27, %s1892_s10 }
 0x2dc   :  { %p1359_p9 = pnand %p1357_p8, %p1354_p7 }
 0x2de   :  { %1362 = shalt.err (!%p1359_p9)
}
 0x2df   :  { %1138 = dma.vmem_to_hbm [thread:$0]  %s1133_s9, 1024, %s1892_s10, [#allocation5], %s1370_s23, %s1370_s23, %s1371_s24  }
 0x2e0   :  { %1367 = dma.done.wait [#allocation5], 1024  }
 0x2e1   :  { %1368 = vsyncadd [#allocation5], 4294966272 }
 0x2e2   :  { %1142 = vsyncpa [#allocation4], 1 }
 0x2e3   :  { %1143 = vsyncpa [#allocation7], 1 }
 0x2e4   :  { %1144 = vsyncpa [#allocation5], 1 }

</bundles_post_ra>
